<compile_context>
chip_gen: v7x
topology: tpu7x:2x2x1
jax: 0.10.0
libtpu: 0.0.40
codegen_flags: <defaults>
</compile_context>

<pallas_src>
import functools

import jax
import jax.numpy as jnp
from jax.experimental import pallas as pl
from jax.experimental.pallas import tpu as pltpu


def _round_up(x, m):
    return (x + m - 1) // m * m


# --------------------------------------------------------------------------
# Kernel
# --------------------------------------------------------------------------
def _autoencoder_kernel(
    x_ref,
    # encoder weights / biases (padded; weights already in compute dtype)
    we0, be0, we1, be1, we2, be2, we3, be3,
    # decoder weights / biases
    wd0, bd0, wd1, bd1, wd2, bd2, wd3, bd3,
    # outputs
    enc_ref, dec_ref,
    *, compute_dtype,
):
    x = x_ref[...]

    def linear(h, w_ref, b_ref):
        # lhs cast only (weights were pre-cast in the wrapper); f32 accumulate.
        y = jnp.dot(h.astype(compute_dtype), w_ref[...],
                    preferred_element_type=jnp.float32)
        return y + b_ref[...]          # bias add / activations stay in f32

    # ---- encoder ----
    h = jnp.maximum(linear(x, we0, be0), 0.0)
    h = jnp.maximum(linear(h, we1, be1), 0.0)
    h = jnp.maximum(linear(h, we2, be2), 0.0)
    encoded = linear(h, we3, be3)
    enc_ref[...] = encoded.astype(enc_ref.dtype)

    # ---- decoder ----
    h = jnp.maximum(linear(encoded, wd0, bd0), 0.0)
    h = jnp.maximum(linear(h, wd1, bd1), 0.0)
    h = jnp.maximum(linear(h, wd2, bd2), 0.0)
    z = linear(h, wd3, bd3)
    # sigmoid: exp and reciprocal both on the EUP slot (free wrt VPU/MXU)
    dec_ref[...] = pl.reciprocal(1.0 + jnp.exp(-z), approx=True).astype(dec_ref.dtype)


# --------------------------------------------------------------------------
# Parameter preparation (call ONCE and cache; not on the per-call path)
# --------------------------------------------------------------------------
def prepare_params(params, compute_dtype=jnp.bfloat16):
    """Pad every weight/bias to lane-dense (multiple-of-128) feature dims and
    pre-cast the weight matrices to the matmul compute dtype.

    params: [w0, b0, ..., w7, b7], weights (in, out), biases (1, out).
    Returns (padded_params, dims) where dims[i] = (fin, fout, fin_pad, fout_pad).
    """
    padded, dims = [], []
    for w, b in zip(params[0::2], params[1::2]):
        fin, fout = w.shape
        finp, foutp = _round_up(fin, 128), _round_up(fout, 128)
        wp = jnp.zeros((finp, foutp), compute_dtype).at[:fin, :fout].set(
            w.astype(compute_dtype))
        bp = jnp.zeros((1, foutp), jnp.float32).at[:, :fout].set(
            b.astype(jnp.float32))
        padded += [wp, bp]
        dims.append((fin, fout, finp, foutp))
    return padded, dims


# --------------------------------------------------------------------------
# Forward wrapper
# --------------------------------------------------------------------------
def autoencoder_forward(x, prepared_params, *, bm=512):
    """x: (B, F) float32.  prepared_params: output of prepare_params().
    Returns (encoded (B, D) f32, decoded (B, F) f32)."""
    padded, dims = prepared_params
    compute_dtype = padded[0].dtype
    cd_itemsize = jnp.dtype(compute_dtype).itemsize

    B, F_dim = x.shape
    assert F_dim == dims[0][0], "input feature dim mismatch with params"
    D = dims[3][1]                    # encoder last layer out dim (latent)
    Fp = padded[0].shape[0]           # padded F
    Dp = padded[6].shape[1]           # padded D

    # --- batch tile: sublane-packing aware, >=2 grid steps when possible ----
    mult = 16 if compute_dtype == jnp.bfloat16 else 8
    B_mult = _round_up(B, mult)
    bm_eff = max(mult, min(_round_up(bm, mult), B_mult))
    if B_mult >= 2 * mult:            # keep both v7x TensorCores busy
        bm_eff = min(bm_eff, max(mult, _round_up((B + 1) // 2, mult)))

    # --- VMEM budget (weights resident once + dbl-buffered I/O tiles +
    #     live intermediate activations of the fused 8-layer chain) ----------
    weight_bytes = sum(int(p.size) * p.dtype.itemsize for p in padded)
    pair_max = max(finp + foutp for (_, _, finp, foutp) in dims)  # peak in+out
    in_max = max(finp for (_, _, finp, foutp) in dims)

    def _vmem_needed(bm_e):
        io_tiles = bm_e * (2 * Fp + Dp) * 4            # x + dec + enc tiles
        act_live = bm_e * pair_max * 4 + bm_e * in_max * cd_itemsize
        return weight_bytes + 2 * io_tiles + act_live + (4 << 20)

    try:
        vmem_cap = int(getattr(pltpu.get_tpu_info(), "vmem_capacity_bytes",
                               64 << 20))
    except Exception:
        vmem_cap = 64 << 20           # conservative (v7x-sized) fallback
    vmem_ceiling = vmem_cap * 3 // 4  # ~96 MiB on v5e/v6e, ~48 MiB on v7x

    while bm_eff > mult and _vmem_needed(bm_eff) > vmem_ceiling:
        bm_eff = max(mult, _round_up(bm_eff // 2, mult))
    # TODO(synk): if the (bf16) weights alone exceed the v7x VMEM ceiling
    # (very large F/H), fall back to K-pipelined per-layer weight BlockSpecs
    # instead of full VMEM residency.

    B_pad = _round_up(B, bm_eff)
    xp = jnp.zeros((B_pad, Fp), x.dtype).at[:B, :F_dim].set(x)
    grid = (B_pad // bm_eff,)

    # --- specs ---------------------------------------------------------------
    x_spec = pl.BlockSpec((bm_eff, Fp), lambda i: (i, 0))
    # Whole weight/bias arrays resident in VMEM once (no per-step re-DMA).
    param_specs = [pl.BlockSpec(memory_space=pltpu.MemorySpace.VMEM)
                   for _ in padded]
    out_specs = [
        pl.BlockSpec((bm_eff, Dp), lambda i: (i, 0)),
        pl.BlockSpec((bm_eff, Fp), lambda i: (i, 0)),
    ]
    out_shapes = (
        jax.ShapeDtypeStruct((B_pad, Dp), jnp.float32),
        jax.ShapeDtypeStruct((B_pad, Fp), jnp.float32),
    )

    # --- scheduler cost hint -------------------------------------------------
    flops = 2 * B_pad * sum(finp * foutp for (_, _, finp, foutp) in dims)
    bytes_accessed = (weight_bytes + int(xp.size) * 4
                      + B_pad * (Dp + Fp) * 4)
    cost = pl.CostEstimate(flops=flops,
                           transcendentals=B_pad * Fp,      # exp in sigmoid
                           bytes_accessed=bytes_accessed)

    vmem_limit = int(min(_vmem_needed(bm_eff), vmem_ceiling))

    kernel = functools.partial(_autoencoder_kernel, compute_dtype=compute_dtype)

    enc_p, dec_p = pl.pallas_call(
        kernel,
        out_shape=out_shapes,
        grid_spec=pltpu.PrefetchScalarGridSpec(
            num_scalar_prefetch=0,
            grid=grid,
            in_specs=[x_spec] + param_specs,
            out_specs=out_specs,
        ),
        compiler_params=pltpu.CompilerParams(
            dimension_semantics=("parallel",),     # batch axis -> both TCs
            vmem_limit_bytes=vmem_limit,
        ),
        cost_estimate=cost,
    )(xp, *padded)

    # slice off padding (padded sigmoid columns would be 0.5 — dropped here)
    return enc_p[:B, :D], dec_p[:B, :F_dim]


# --------------------------------------------------------------------------
# Reference / init helpers
# --------------------------------------------------------------------------
def init_params(key, F_dim, H, D):
    """PyTorch nn.Linear-style init (uniform ±1/sqrt(fan_in)); weights (in, out)."""
    dims = [
        (F_dim, H * 4), (H * 4, H * 2), (H * 2, H), (H, D),          # encoder
        (D, H), (H, H * 2), (H * 2, H * 4), (H * 4, F_dim),          # decoder
    ]
    params = []
    for fan_in, fan_out in dims:
        key, kw, kb = jax.random.split(key, 3)
        bound = 1.0 / jnp.sqrt(jnp.float32(fan_in))
        w = jax.random.uniform(kw, (fan_in, fan_out), jnp.float32, -bound, bound)
        b = jax.random.uniform(kb, (1, fan_out), jnp.float32, -bound, bound)
        params += [w, b]
    return params


def reference_forward(x, params):
    ws, bs = params[0::2], params[1::2]
    h = x
    for i in range(3):
        h = jnp.maximum(h @ ws[i] + bs[i], 0.0)
    encoded = h @ ws[3] + bs[3]
    h = encoded
    for i in range(4, 7):
        h = jnp.maximum(h @ ws[i] + bs[i], 0.0)
    decoded = jax.nn.sigmoid(h @ ws[7] + bs[7])
    return encoded, decoded


if __name__ == "__main__":
    # small shapes consistent with the module: F=64 features, H=32 hidden, D=16
    B, F_dim, H, D = 64, 64, 32, 16

    key = jax.random.PRNGKey(0)
    key, kx = jax.random.split(key)
    x = jax.random.normal(kx, (B, F_dim), jnp.float32)
    params = init_params(jax.random.PRNGKey(0), F_dim, H, D)
    enc_ref, dec_ref = reference_forward(x, params)

    # Default path: bf16 matmul operands (f32 accumulate / epilogue).
    # With B=64 the tile is capped to 32 rows -> a 2-step "parallel" grid.
    prep_bf16 = prepare_params(params, jnp.bfloat16)
    enc, dec = autoencoder_forward(x, prep_bf16)
    enc, dec = jax.block_until_ready((enc, dec))
    assert enc.shape == (B, D) and dec.shape == (B, F_dim)
    assert jnp.allclose(enc, enc_ref, atol=5e-2, rtol=5e-2)
    assert jnp.allclose(dec, dec_ref, atol=5e-2, rtol=5e-2)

    # f32-operand path (exactness check; only the approx sigmoid reciprocal
    # differs from the reference).
    prep_f32 = prepare_params(params, jnp.float32)
    enc32, dec32 = autoencoder_forward(x, prep_f32)
    enc32, dec32 = jax.block_until_ready((enc32, dec32))
    assert jnp.allclose(enc32, enc_ref, atol=1e-4, rtol=1e-4)
    assert jnp.allclose(dec32, dec_ref, atol=2e-3, rtol=2e-3)

    print("KERNEL_OK")
</pallas_src>

<mosaic_0001>
module attributes {stable_mosaic.version = 11 : i64} {
  func.func @_autoencoder_kernel(%arg0: i32, %arg1: memref<32x128xf32, #tpu.memory_space<vmem>>, %arg2: memref<128x128xbf16, #tpu.memory_space<vmem>>, %arg3: memref<1x128xf32, #tpu.memory_space<vmem>>, %arg4: memref<128x128xbf16, #tpu.memory_space<vmem>>, %arg5: memref<1x128xf32, #tpu.memory_space<vmem>>, %arg6: memref<128x128xbf16, #tpu.memory_space<vmem>>, %arg7: memref<1x128xf32, #tpu.memory_space<vmem>>, %arg8: memref<128x128xbf16, #tpu.memory_space<vmem>>, %arg9: memref<1x128xf32, #tpu.memory_space<vmem>>, %arg10: memref<128x128xbf16, #tpu.memory_space<vmem>>, %arg11: memref<1x128xf32, #tpu.memory_space<vmem>>, %arg12: memref<128x128xbf16, #tpu.memory_space<vmem>>, %arg13: memref<1x128xf32, #tpu.memory_space<vmem>>, %arg14: memref<128x128xbf16, #tpu.memory_space<vmem>>, %arg15: memref<1x128xf32, #tpu.memory_space<vmem>>, %arg16: memref<128x128xbf16, #tpu.memory_space<vmem>>, %arg17: memref<1x128xf32, #tpu.memory_space<vmem>>, %arg18: memref<32x128xf32, #tpu.memory_space<vmem>>, %arg19: memref<32x128xf32, #tpu.memory_space<vmem>>) attributes {dimension_semantics = [#tpu.dimension_semantics<parallel>], iteration_bounds = array<i64: 2>, scalar_prefetch = 0 : i64, scratch_operands = 0 : i64, tpu.core_type = #tpu.core_type<tc>, window_params = [{transform_indices = @transform_0, window_bounds = array<i64: 32, 128>}, {pipeline_mode = #tpu.pipeline_mode<synchronous>, transform_indices = @transform_1, window_bounds = array<i64: 128, 128>}, {pipeline_mode = #tpu.pipeline_mode<synchronous>, transform_indices = @transform_2, window_bounds = array<i64: 1, 128>}, {pipeline_mode = #tpu.pipeline_mode<synchronous>, transform_indices = @transform_3, window_bounds = array<i64: 128, 128>}, {pipeline_mode = #tpu.pipeline_mode<synchronous>, transform_indices = @transform_4, window_bounds = array<i64: 1, 128>}, {pipeline_mode = #tpu.pipeline_mode<synchronous>, transform_indices = @transform_5, window_bounds = array<i64: 128, 128>}, {pipeline_mode = #tpu.pipeline_mode<synchronous>, transform_indices = @transform_6, window_bounds = array<i64: 1, 128>}, {pipeline_mode = #tpu.pipeline_mode<synchronous>, transform_indices = @transform_7, window_bounds = array<i64: 128, 128>}, {pipeline_mode = #tpu.pipeline_mode<synchronous>, transform_indices = @transform_8, window_bounds = array<i64: 1, 128>}, {pipeline_mode = #tpu.pipeline_mode<synchronous>, transform_indices = @transform_9, window_bounds = array<i64: 128, 128>}, {pipeline_mode = #tpu.pipeline_mode<synchronous>, transform_indices = @transform_10, window_bounds = array<i64: 1, 128>}, {pipeline_mode = #tpu.pipeline_mode<synchronous>, transform_indices = @transform_11, window_bounds = array<i64: 128, 128>}, {pipeline_mode = #tpu.pipeline_mode<synchronous>, transform_indices = @transform_12, window_bounds = array<i64: 1, 128>}, {pipeline_mode = #tpu.pipeline_mode<synchronous>, transform_indices = @transform_13, window_bounds = array<i64: 128, 128>}, {pipeline_mode = #tpu.pipeline_mode<synchronous>, transform_indices = @transform_14, window_bounds = array<i64: 1, 128>}, {pipeline_mode = #tpu.pipeline_mode<synchronous>, transform_indices = @transform_15, window_bounds = array<i64: 128, 128>}, {pipeline_mode = #tpu.pipeline_mode<synchronous>, transform_indices = @transform_16, window_bounds = array<i64: 1, 128>}, {transform_indices = @transform_17, window_bounds = array<i64: 32, 128>}, {transform_indices = @transform_18, window_bounds = array<i64: 32, 128>}]} {
    %c0 = arith.constant 0 : index
    %c0_0 = arith.constant 0 : index
    %0 = vector.load %arg1[%c0, %c0_0] : memref<32x128xf32, #tpu.memory_space<vmem>>, vector<32x128xf32>
    %1 = arith.truncf %0 : vector<32x128xf32> to vector<32x128xbf16>
    %c0_1 = arith.constant 0 : index
    %c0_2 = arith.constant 0 : index
    %2 = vector.load %arg2[%c0_1, %c0_2] : memref<128x128xbf16, #tpu.memory_space<vmem>>, vector<128x128xbf16>
    %cst = arith.constant dense<0.000000e+00> : vector<32x128xf32>
    %3 = tpu.matmul %1, %2, %cst {dimension_numbers = #tpu.dot_dimension_numbers<[1], [0], [0], [1], [0, 0, 1, 1], [], []>} : vector<32x128xbf16>, vector<128x128xbf16>, vector<32x128xf32> -> vector<32x128xf32>
    %c0_3 = arith.constant 0 : index
    %c0_4 = arith.constant 0 : index
    %4 = vector.load %arg3[%c0_3, %c0_4] : memref<1x128xf32, #tpu.memory_space<vmem>>, vector<1x128xf32>
    %5 = vector.broadcast %4 : vector<1x128xf32> to vector<32x128xf32>
    %6 = arith.addf %3, %5 : vector<32x128xf32>
    %cst_5 = arith.constant 0.000000e+00 : f32
    %7 = vector.broadcast %cst_5 : f32 to vector<32x128xf32>
    %8 = arith.maximumf %6, %7 : vector<32x128xf32>
    %9 = arith.truncf %8 : vector<32x128xf32> to vector<32x128xbf16>
    %c0_6 = arith.constant 0 : index
    %c0_7 = arith.constant 0 : index
    %10 = vector.load %arg4[%c0_6, %c0_7] : memref<128x128xbf16, #tpu.memory_space<vmem>>, vector<128x128xbf16>
    %cst_8 = arith.constant dense<0.000000e+00> : vector<32x128xf32>
    %11 = tpu.matmul %9, %10, %cst_8 {dimension_numbers = #tpu.dot_dimension_numbers<[1], [0], [0], [1], [0, 0, 1, 1], [], []>} : vector<32x128xbf16>, vector<128x128xbf16>, vector<32x128xf32> -> vector<32x128xf32>
    %c0_9 = arith.constant 0 : index
    %c0_10 = arith.constant 0 : index
    %12 = vector.load %arg5[%c0_9, %c0_10] : memref<1x128xf32, #tpu.memory_space<vmem>>, vector<1x128xf32>
    %13 = vector.broadcast %12 : vector<1x128xf32> to vector<32x128xf32>
    %14 = arith.addf %11, %13 : vector<32x128xf32>
    %cst_11 = arith.constant 0.000000e+00 : f32
    %15 = vector.broadcast %cst_11 : f32 to vector<32x128xf32>
    %16 = arith.maximumf %14, %15 : vector<32x128xf32>
    %17 = arith.truncf %16 : vector<32x128xf32> to vector<32x128xbf16>
    %c0_12 = arith.constant 0 : index
    %c0_13 = arith.constant 0 : index
    %18 = vector.load %arg6[%c0_12, %c0_13] : memref<128x128xbf16, #tpu.memory_space<vmem>>, vector<128x128xbf16>
    %cst_14 = arith.constant dense<0.000000e+00> : vector<32x128xf32>
    %19 = tpu.matmul %17, %18, %cst_14 {dimension_numbers = #tpu.dot_dimension_numbers<[1], [0], [0], [1], [0, 0, 1, 1], [], []>} : vector<32x128xbf16>, vector<128x128xbf16>, vector<32x128xf32> -> vector<32x128xf32>
    %c0_15 = arith.constant 0 : index
    %c0_16 = arith.constant 0 : index
    %20 = vector.load %arg7[%c0_15, %c0_16] : memref<1x128xf32, #tpu.memory_space<vmem>>, vector<1x128xf32>
    %21 = vector.broadcast %20 : vector<1x128xf32> to vector<32x128xf32>
    %22 = arith.addf %19, %21 : vector<32x128xf32>
    %cst_17 = arith.constant 0.000000e+00 : f32
    %23 = vector.broadcast %cst_17 : f32 to vector<32x128xf32>
    %24 = arith.maximumf %22, %23 : vector<32x128xf32>
    %25 = arith.truncf %24 : vector<32x128xf32> to vector<32x128xbf16>
    %c0_18 = arith.constant 0 : index
    %c0_19 = arith.constant 0 : index
    %26 = vector.load %arg8[%c0_18, %c0_19] : memref<128x128xbf16, #tpu.memory_space<vmem>>, vector<128x128xbf16>
    %cst_20 = arith.constant dense<0.000000e+00> : vector<32x128xf32>
    %27 = tpu.matmul %25, %26, %cst_20 {dimension_numbers = #tpu.dot_dimension_numbers<[1], [0], [0], [1], [0, 0, 1, 1], [], []>} : vector<32x128xbf16>, vector<128x128xbf16>, vector<32x128xf32> -> vector<32x128xf32>
    %c0_21 = arith.constant 0 : index
    %c0_22 = arith.constant 0 : index
    %28 = vector.load %arg9[%c0_21, %c0_22] : memref<1x128xf32, #tpu.memory_space<vmem>>, vector<1x128xf32>
    %29 = vector.broadcast %28 : vector<1x128xf32> to vector<32x128xf32>
    %30 = arith.addf %27, %29 : vector<32x128xf32>
    %c0_23 = arith.constant 0 : index
    %c0_24 = arith.constant 0 : index
    %31 = vector.load %arg18[%c0_23, %c0_24] : memref<32x128xf32, #tpu.memory_space<vmem>>, vector<32x128xf32>
    tpu.vector_store %arg18[%c0_23, %c0_24], %30 {strides = array<i32>} : memref<32x128xf32, #tpu.memory_space<vmem>>, vector<32x128xf32>,
    %32 = arith.truncf %30 : vector<32x128xf32> to vector<32x128xbf16>
    %c0_25 = arith.constant 0 : index
    %c0_26 = arith.constant 0 : index
    %33 = vector.load %arg10[%c0_25, %c0_26] : memref<128x128xbf16, #tpu.memory_space<vmem>>, vector<128x128xbf16>
    %cst_27 = arith.constant dense<0.000000e+00> : vector<32x128xf32>
    %34 = tpu.matmul %32, %33, %cst_27 {dimension_numbers = #tpu.dot_dimension_numbers<[1], [0], [0], [1], [0, 0, 1, 1], [], []>} : vector<32x128xbf16>, vector<128x128xbf16>, vector<32x128xf32> -> vector<32x128xf32>
    %c0_28 = arith.constant 0 : index
    %c0_29 = arith.constant 0 : index
    %35 = vector.load %arg11[%c0_28, %c0_29] : memref<1x128xf32, #tpu.memory_space<vmem>>, vector<1x128xf32>
    %36 = vector.broadcast %35 : vector<1x128xf32> to vector<32x128xf32>
    %37 = arith.addf %34, %36 : vector<32x128xf32>
    %cst_30 = arith.constant 0.000000e+00 : f32
    %38 = vector.broadcast %cst_30 : f32 to vector<32x128xf32>
    %39 = arith.maximumf %37, %38 : vector<32x128xf32>
    %40 = arith.truncf %39 : vector<32x128xf32> to vector<32x128xbf16>
    %c0_31 = arith.constant 0 : index
    %c0_32 = arith.constant 0 : index
    %41 = vector.load %arg12[%c0_31, %c0_32] : memref<128x128xbf16, #tpu.memory_space<vmem>>, vector<128x128xbf16>
    %cst_33 = arith.constant dense<0.000000e+00> : vector<32x128xf32>
    %42 = tpu.matmul %40, %41, %cst_33 {dimension_numbers = #tpu.dot_dimension_numbers<[1], [0], [0], [1], [0, 0, 1, 1], [], []>} : vector<32x128xbf16>, vector<128x128xbf16>, vector<32x128xf32> -> vector<32x128xf32>
    %c0_34 = arith.constant 0 : index
    %c0_35 = arith.constant 0 : index
    %43 = vector.load %arg13[%c0_34, %c0_35] : memref<1x128xf32, #tpu.memory_space<vmem>>, vector<1x128xf32>
    %44 = vector.broadcast %43 : vector<1x128xf32> to vector<32x128xf32>
    %45 = arith.addf %42, %44 : vector<32x128xf32>
    %cst_36 = arith.constant 0.000000e+00 : f32
    %46 = vector.broadcast %cst_36 : f32 to vector<32x128xf32>
    %47 = arith.maximumf %45, %46 : vector<32x128xf32>
    %48 = arith.truncf %47 : vector<32x128xf32> to vector<32x128xbf16>
    %c0_37 = arith.constant 0 : index
    %c0_38 = arith.constant 0 : index
    %49 = vector.load %arg14[%c0_37, %c0_38] : memref<128x128xbf16, #tpu.memory_space<vmem>>, vector<128x128xbf16>
    %cst_39 = arith.constant dense<0.000000e+00> : vector<32x128xf32>
    %50 = tpu.matmul %48, %49, %cst_39 {dimension_numbers = #tpu.dot_dimension_numbers<[1], [0], [0], [1], [0, 0, 1, 1], [], []>} : vector<32x128xbf16>, vector<128x128xbf16>, vector<32x128xf32> -> vector<32x128xf32>
    %c0_40 = arith.constant 0 : index
    %c0_41 = arith.constant 0 : index
    %51 = vector.load %arg15[%c0_40, %c0_41] : memref<1x128xf32, #tpu.memory_space<vmem>>, vector<1x128xf32>
    %52 = vector.broadcast %51 : vector<1x128xf32> to vector<32x128xf32>
    %53 = arith.addf %50, %52 : vector<32x128xf32>
    %cst_42 = arith.constant 0.000000e+00 : f32
    %54 = vector.broadcast %cst_42 : f32 to vector<32x128xf32>
    %55 = arith.maximumf %53, %54 : vector<32x128xf32>
    %56 = arith.truncf %55 : vector<32x128xf32> to vector<32x128xbf16>
    %c0_43 = arith.constant 0 : index
    %c0_44 = arith.constant 0 : index
    %57 = vector.load %arg16[%c0_43, %c0_44] : memref<128x128xbf16, #tpu.memory_space<vmem>>, vector<128x128xbf16>
    %cst_45 = arith.constant dense<0.000000e+00> : vector<32x128xf32>
    %58 = tpu.matmul %56, %57, %cst_45 {dimension_numbers = #tpu.dot_dimension_numbers<[1], [0], [0], [1], [0, 0, 1, 1], [], []>} : vector<32x128xbf16>, vector<128x128xbf16>, vector<32x128xf32> -> vector<32x128xf32>
    %c0_46 = arith.constant 0 : index
    %c0_47 = arith.constant 0 : index
    %59 = vector.load %arg17[%c0_46, %c0_47] : memref<1x128xf32, #tpu.memory_space<vmem>>, vector<1x128xf32>
    %60 = vector.broadcast %59 : vector<1x128xf32> to vector<32x128xf32>
    %61 = arith.addf %58, %60 : vector<32x128xf32>
    %cst_48 = arith.constant 0.000000e+00 : f32
    %62 = vector.broadcast %cst_48 : f32 to vector<32x128xf32>
    %63 = arith.subf %62, %61 : vector<32x128xf32>
    %64 = math.exp %63 : vector<32x128xf32>
    %cst_49 = arith.constant 1.000000e+00 : f32
    %65 = vector.broadcast %cst_49 : f32 to vector<32x128xf32>
    %66 = arith.addf %65, %64 : vector<32x128xf32>
    %67 = tpu.reciprocal %66 {approx = true} : vector<32x128xf32> -> vector<32x128xf32>
    %c0_50 = arith.constant 0 : index
    %c0_51 = arith.constant 0 : index
    %68 = vector.load %arg19[%c0_50, %c0_51] : memref<32x128xf32, #tpu.memory_space<vmem>>, vector<32x128xf32>
    tpu.vector_store %arg19[%c0_50, %c0_51], %67 {strides = array<i32>} : memref<32x128xf32, #tpu.memory_space<vmem>>, vector<32x128xf32>,
    return
  }
  func.func @transform_0(%arg0: i32) -> (i32, i32) {
    %c0_i32 = arith.constant 0 : i32
    %c0_i32_0 = arith.constant 0 : i32
    return %arg0, %c0_i32 : i32, i32
  }
  func.func @transform_1(%arg0: i32) -> (i32, i32) {
    %c0_i32 = arith.constant 0 : i32
    %c0_i32_0 = arith.constant 0 : i32
    %c0_i32_1 = arith.constant 0 : i32
    return %c0_i32, %c0_i32_0 : i32, i32
  }
  func.func @transform_2(%arg0: i32) -> (i32, i32) {
    %c0_i32 = arith.constant 0 : i32
    %c0_i32_0 = arith.constant 0 : i32
    %c0_i32_1 = arith.constant 0 : i32
    return %c0_i32, %c0_i32_0 : i32, i32
  }
  func.func @transform_3(%arg0: i32) -> (i32, i32) {
    %c0_i32 = arith.constant 0 : i32
    %c0_i32_0 = arith.constant 0 : i32
    %c0_i32_1 = arith.constant 0 : i32
    return %c0_i32, %c0_i32_0 : i32, i32
  }
  func.func @transform_4(%arg0: i32) -> (i32, i32) {
    %c0_i32 = arith.constant 0 : i32
    %c0_i32_0 = arith.constant 0 : i32
    %c0_i32_1 = arith.constant 0 : i32
    return %c0_i32, %c0_i32_0 : i32, i32
  }
  func.func @transform_5(%arg0: i32) -> (i32, i32) {
    %c0_i32 = arith.constant 0 : i32
    %c0_i32_0 = arith.constant 0 : i32
    %c0_i32_1 = arith.constant 0 : i32
    return %c0_i32, %c0_i32_0 : i32, i32
  }
  func.func @transform_6(%arg0: i32) -> (i32, i32) {
    %c0_i32 = arith.constant 0 : i32
    %c0_i32_0 = arith.constant 0 : i32
    %c0_i32_1 = arith.constant 0 : i32
    return %c0_i32, %c0_i32_0 : i32, i32
  }
  func.func @transform_7(%arg0: i32) -> (i32, i32) {
    %c0_i32 = arith.constant 0 : i32
    %c0_i32_0 = arith.constant 0 : i32
    %c0_i32_1 = arith.constant 0 : i32
    return %c0_i32, %c0_i32_0 : i32, i32
  }
  func.func @transform_8(%arg0: i32) -> (i32, i32) {
    %c0_i32 = arith.constant 0 : i32
    %c0_i32_0 = arith.constant 0 : i32
    %c0_i32_1 = arith.constant 0 : i32
    return %c0_i32, %c0_i32_0 : i32, i32
  }
  func.func @transform_9(%arg0: i32) -> (i32, i32) {
    %c0_i32 = arith.constant 0 : i32
    %c0_i32_0 = arith.constant 0 : i32
    %c0_i32_1 = arith.constant 0 : i32
    return %c0_i32, %c0_i32_0 : i32, i32
  }
  func.func @transform_10(%arg0: i32) -> (i32, i32) {
    %c0_i32 = arith.constant 0 : i32
    %c0_i32_0 = arith.constant 0 : i32
    %c0_i32_1 = arith.constant 0 : i32
    return %c0_i32, %c0_i32_0 : i32, i32
  }
  func.func @transform_11(%arg0: i32) -> (i32, i32) {
    %c0_i32 = arith.constant 0 : i32
    %c0_i32_0 = arith.constant 0 : i32
    %c0_i32_1 = arith.constant 0 : i32
    return %c0_i32, %c0_i32_0 : i32, i32
  }
  func.func @transform_12(%arg0: i32) -> (i32, i32) {
    %c0_i32 = arith.constant 0 : i32
    %c0_i32_0 = arith.constant 0 : i32
    %c0_i32_1 = arith.constant 0 : i32
    return %c0_i32, %c0_i32_0 : i32, i32
  }
  func.func @transform_13(%arg0: i32) -> (i32, i32) {
    %c0_i32 = arith.constant 0 : i32
    %c0_i32_0 = arith.constant 0 : i32
    %c0_i32_1 = arith.constant 0 : i32
    return %c0_i32, %c0_i32_0 : i32, i32
  }
  func.func @transform_14(%arg0: i32) -> (i32, i32) {
    %c0_i32 = arith.constant 0 : i32
    %c0_i32_0 = arith.constant 0 : i32
    %c0_i32_1 = arith.constant 0 : i32
    return %c0_i32, %c0_i32_0 : i32, i32
  }
  func.func @transform_15(%arg0: i32) -> (i32, i32) {
    %c0_i32 = arith.constant 0 : i32
    %c0_i32_0 = arith.constant 0 : i32
    %c0_i32_1 = arith.constant 0 : i32
    return %c0_i32, %c0_i32_0 : i32, i32
  }
  func.func @transform_16(%arg0: i32) -> (i32, i32) {
    %c0_i32 = arith.constant 0 : i32
    %c0_i32_0 = arith.constant 0 : i32
    %c0_i32_1 = arith.constant 0 : i32
    return %c0_i32, %c0_i32_0 : i32, i32
  }
  func.func @transform_17(%arg0: i32) -> (i32, i32) {
    %c0_i32 = arith.constant 0 : i32
    %c0_i32_0 = arith.constant 0 : i32
    return %arg0, %c0_i32 : i32, i32
  }
  func.func @transform_18(%arg0: i32) -> (i32, i32) {
    %c0_i32 = arith.constant 0 : i32
    %c0_i32_0 = arith.constant 0 : i32
    return %arg0, %c0_i32 : i32, i32
  }
}

</mosaic_0001>

<bundles_post_ra>
// kernel: tpu_custom_call.1
= control target key start
LH: loop header
LB: loop body
LE: loop exit
PB: predicated region body
PF: predicated region fallthrough
CT: control target
= control target key end

     0   :  { %s3494_s0 = inlined_call_operand.hbm [shape: f32[64,128], index: 0, kind: input, shape index: {}]   ;;  %s3495_s1 = inlined_call_operand.hbm [shape: bf16[128,128], index: 1, kind: input, shape index: {}]   ;;  %s3496_s2 = inlined_call_operand.vmem [shape: f32[1,128], index: 2, kind: input, shape index: {}]   ;;  %s3497_s3 = inlined_call_operand.hbm [shape: bf16[128,128], index: 3, kind: input, shape index: {}]   ;;  %s3498_s4 = inlined_call_operand.vmem [shape: f32[1,128], index: 4, kind: input, shape index: {}]   ;;  %s3499_s5 = inlined_call_operand.hbm [shape: bf16[128,128], index: 5, kind: input, shape index: {}]   ;;  %s3500_s6 = inlined_call_operand.vmem [shape: f32[1,128], index: 6, kind: input, shape index: {}]   ;;  %s3501_s7 = inlined_call_operand.hbm [shape: bf16[128,128], index: 7, kind: input, shape index: {}]   ;;  %s3502_s8 = inlined_call_operand.vmem [shape: f32[1,128], index: 8, kind: input, shape index: {}]   ;;  %s3503_s9 = inlined_call_operand.hbm [shape: bf16[128,128], index: 9, kind: input, shape index: {}]   ;;  %s3504_s10 = inlined_call_operand.vmem [shape: f32[1,128], index: 10, kind: input, shape index: {}]   ;;  %s3505_s11 = inlined_call_operand.hbm [shape: bf16[128,128], index: 11, kind: input, shape index: {}]   ;;  %s3506_s12 = inlined_call_operand.vmem [shape: f32[1,128], index: 12, kind: input, shape index: {}]   ;;  %s3507_s13 = inlined_call_operand.hbm [shape: bf16[128,128], index: 13, kind: input, shape index: {}]   ;;  %s3508_s14 = inlined_call_operand.vmem [shape: f32[1,128], index: 14, kind: input, shape index: {}]   ;;  %s3509_s15 = inlined_call_operand.hbm [shape: bf16[128,128], index: 15, kind: input, shape index: {}]   ;;  %s3510_s16 = inlined_call_operand.vmem [shape: f32[1,128], index: 16, kind: input, shape index: {}]   ;;  %s3511_s17 = inlined_call_operand.hbm [shape: f32[64,128], index: 17, kind: output, shape index: {0}]   ;;  %s3512_s18 = inlined_call_operand.hbm [shape: f32[64,128], index: 18, kind: output, shape index: {1}]  }
   0x1   :  { %3523 = sst [smem:[#allocation27_spill]] %s3494_s0 }
   0x2   :  { %3524 = sst [smem:[#allocation28_spill]] %s3495_s1 }
   0x3   :  { %3525 = sst [smem:[#allocation29_spill]] %s3496_s2 }
   0x4   :  { %3526 = sst [smem:[#allocation30_spill]] %s3500_s6 }
   0x5   :  { %3527 = sst [smem:[#allocation31_spill]] %s3502_s8 }
   0x6   :  { %3528 = sst [smem:[#allocation32_spill]] %s3504_s10 }
   0x7   :  { %3529 = sst [smem:[#allocation33_spill]] %s3506_s12 }
   0x8   :  { %3530 = sst [smem:[#allocation34_spill]] %s3508_s14 }
   0x9   :  { %3531 = sst [smem:[#allocation35_spill]] %s3510_s16 }
   0xa   :  { %3532 = sst [smem:[#allocation36_spill]] %s3511_s17 }
   0xb   :  { %3533 = sst [smem:[#allocation37_spill]] %s3512_s18 }
   0xc   :  { %24 = vsyncpa [#allocation3], 0 }
   0xd   :  { %26 = vsyncpa [#allocation3 + $0x1], 0 }
   0xe   :  { %27 = vsyncpa [#allocation6], 0 }
   0xf   :  { %28 = vsyncpa [#allocation9], 0 }
  0x10   :  { %29 = vsyncpa [#allocation12], 0 }
  0x11   :  { %30 = vsyncpa [#allocation15], 0 }
  0x12   :  { %31 = vsyncpa [#allocation4], 0 }
  0x13   :  { %33 = vsyncpa [#allocation4 + $0x1], 0 }
  0x14   :  { %34 = vsyncpa [#allocation19], 0 }
  0x15   :  { %36 = vsyncpa [#allocation19 + $0x1], 0  ;;  %s3022_s27 = smov 0   ;;  %s3024_s28 = smov 0  }
  0x16   :  { %s3026_s29 = smov 0   ;;  %s3028_s30 = smov 0  }
  0x17 LB: > { %s2910_s0 = smov [#allocation5]   ;;  %s3043_s1 = sadd.s32 4294967295, %s2908_s30   ;;  %s2908_s30 = sphi %s3028_s30, %s3573_s30   ;;  %s2904_s29 = sphi %s3026_s29, %s3572_s29   ;;  %s2900_s28 = sphi %s3024_s28, %s3571_s28   ;;  %s2896_s27 = sphi %s3022_s27, %s3570_s27  }
  0x18   : > { %s473_s19 = sshll.u32 %s2910_s0, 4  ;;  %p1974_p0 = scmp.ge.s32.totalorder %s2908_s30, 1  ;;  %s3048_s19 = int_to_ptr.vmem [resolvable:$true] %s473_s19 }
  0x19   : > { %p3518_p1 = scmp.eq.s32.totalorder %s3043_s1, 0  ;;  %p461_p2 = scmp.lt.s32.totalorder %s2908_s30, 3 }
  0x1a   : > { %s2911_s21 = smov [#allocation8]   ;;  %s2912_s23 = smov [#allocation11]  }
  0x1b   : > { %p3050_p3 = pnand %p1974_p0, %p461_p2  ;;  %s505_s22 = sshll.u32 %s2911_s21, 4  ;;  %s3063_s22 = int_to_ptr.vmem [resolvable:$true] %s505_s22 }
  0x1c   : > { %s537_s24 = sshll.u32 %s2912_s23, 4  ;;  %s3536_s0 = sld [smem:[#allocation28_spill]]  ;;  %s3065_s24 = int_to_ptr.vmem [resolvable:$true] %s537_s24 }
  0x1d   : > { %s3534_s20 = scalar_select %p3050_p3, 1, 0 }
  0x1e   : > { %p2360_p5 = pneg %p3050_p3 }
  0x20   : > { %p3059_p6 = pnand %p2360_p5, %p3518_p1 }
  0x22   : > { %s2540_s18 = scalar_lea.hbm %s3536_s0, 1024  ;;  %p3075_p8 = pneg %p3059_p6 }
  0x23   : > { %p2541_p7 = scmp.ne.s32.totalorder %s3536_s0, %s2540_s18  ;;  %p2547_p11 = scmp.lt.u32.totalorder %s2540_s18, %s3536_s0 }
  0x25   : > { %p2543_p9 = pnand %p3075_p8, %p2541_p7 }
  0x27   : > { %p2544_p10 = pneg %p2543_p9 }
  0x29   : > { %p2549_p12 = pnand %p2547_p11, %p2544_p10 }
  0x2b   : > { %2552 = shalt.err (!%p2549_p12)
}
  0x2c   : > { %s2553_s16 = scalar_lea.vmem %s3048_s19, 1024  ;;  %p2561_p5 = scmp.lt.s32.totalorder %s3048_s19, %s3048_s19 }
  0x2d   : > { %p2554_p13 = scmp.ne.s32.totalorder %s3048_s19, %s2553_s16  ;;  %p2562_p4 = scmp.lt.s32.totalorder %s2553_s16, %s2553_s16 }
  0x2f   : > { %p2556_p0 = pnand %p2554_p13, %p3075_p8  ;;  %p2563_p7 = por %p2562_p4, %p2561_p5 }
  0x31   : > { %p2557_p2 = pneg %p2556_p0 }
  0x33   : > { %p2564_p9 = pnand %p2563_p7, %p2557_p2 }
  0x35   : > { %2567 = shalt.err (!%p2564_p9)
}
  0x36   : > { %s2913_s17 = smov 64   ;;  %s2914_s14 = smov 4  }
  0x37   : > { %2363 = dma.hbm_to_vmem [thread:$0]  (!%p3059_p6), %s3536_s0, 1024, %s3048_s19, [#allocation6], %s2913_s17, %s2913_s17, %s2914_s14  }
  0x38   : > { %s2568_s16 = scalar_lea.hbm %s3499_s5, 1024 }
  0x39   : > { %p2569_p4 = scmp.ne.s32.totalorder %s3499_s5, %s2568_s16  ;;  %p2575_p12 = scmp.lt.u32.totalorder %s2568_s16, %s3499_s5 }
  0x3b   : > { %p2571_p10 = pnand %p2569_p4, %p3075_p8 }
  0x3d   : > { %p2572_p11 = pneg %p2571_p10 }
  0x3f   : > { %p2577_p13 = pnand %p2575_p12, %p2572_p11 }
  0x41   : > { %2580 = shalt.err (!%p2577_p13)
}
  0x42   : > { %s2581_s19 = scalar_lea.vmem %s3063_s22, 1024  ;;  %p2589_p7 = scmp.lt.s32.totalorder %s3063_s22, %s3063_s22 }
  0x43   : > { %p2582_p0 = scmp.ne.s32.totalorder %s3063_s22, %s2581_s19  ;;  %p2590_p9 = scmp.lt.s32.totalorder %s2581_s19, %s2581_s19 }
  0x45   : > { %p2584_p2 = pnand %p2582_p0, %p3075_p8  ;;  %p2591_p4 = por %p2590_p9, %p2589_p7 }
  0x47   : > { %p2585_p5 = pneg %p2584_p2 }
  0x49   : > { %p2592_p10 = pnand %p2591_p4, %p2585_p5 }
  0x4b   : > { %2595 = shalt.err (!%p2592_p10)
}
  0x4c   : > { %2369 = dma.hbm_to_vmem [thread:$0]  (!%p3059_p6), %s3499_s5, 1024, %s3063_s22, [#allocation9], %s2913_s17, %s2913_s17, %s2914_s14  }
  0x4d   : > { %s2596_s18 = scalar_lea.hbm %s3503_s9, 1024 }
  0x4e   : > { %p2597_p11 = scmp.ne.s32.totalorder %s3503_s9, %s2596_s18  ;;  %p2603_p0 = scmp.lt.u32.totalorder %s2596_s18, %s3503_s9 }
  0x50   : > { %p2599_p12 = pnand %p2597_p11, %p3075_p8 }
  0x52   : > { %p2600_p13 = pneg %p2599_p12 }
  0x54   : > { %p2605_p2 = pnand %p2603_p0, %p2600_p13 }
  0x56   : > { %2608 = shalt.err (!%p2605_p2)
}
  0x57   : > { %s2609_s22 = scalar_lea.vmem %s3065_s24, 1024  ;;  %p2617_p4 = scmp.lt.s32.totalorder %s3065_s24, %s3065_s24 }
  0x58   : > { %p2610_p5 = scmp.ne.s32.totalorder %s3065_s24, %s2609_s22  ;;  %p2618_p10 = scmp.lt.s32.totalorder %s2609_s22, %s2609_s22 }
  0x5a   : > { %p2612_p7 = pnand %p2610_p5, %p3075_p8  ;;  %p2619_p11 = por %p2618_p10, %p2617_p4 }
  0x5c   : > { %p2613_p9 = pneg %p2612_p7 }
  0x5e   : > { %p2620_p12 = pnand %p2619_p11, %p2613_p9 }
  0x60   : > { %2623 = shalt.err (!%p2620_p12)
}
  0x61   : > { %2375 = dma.hbm_to_vmem [thread:$0]  (!%p3059_p6), %s3503_s9, 1024, %s3065_s24, [#allocation12], %s2913_s17, %s2913_s17, %s2914_s14  }
  0x62   : > { %s2915_s8 = smov [#allocation14]   ;;  %s2916_s12 = smov [#allocation7]  }
  0x63   : > { %s569_s10 = sshll.u32 %s2915_s8, 4  ;;  %s489_s18 = sshll.u32 %s2916_s12, 4  ;;  %s570_s10 = int_to_ptr.vmem [resolvable:$true] %s569_s10  ;;  %s490_s18 = int_to_ptr.vmem [resolvable:$true] %s489_s18 }
  0x64   : > { %s2624_s23 = scalar_lea.hbm %s3507_s13, 1024 }
  0x65   : > { %p2625_p13 = scmp.ne.s32.totalorder %s3507_s13, %s2624_s23  ;;  %p2631_p5 = scmp.lt.u32.totalorder %s2624_s23, %s3507_s13 }
  0x67   : > { %p2627_p0 = pnand %p2625_p13, %p3075_p8 }
  0x69   : > { %p2628_p2 = pneg %p2627_p0 }
  0x6b   : > { %p2633_p7 = pnand %p2631_p5, %p2628_p2 }
  0x6d   : > { %2636 = shalt.err (!%p2633_p7)
}
  0x6e   : > { %s2637_s24 = scalar_lea.vmem %s570_s10, 1024  ;;  %p2645_p11 = scmp.lt.s32.totalorder %s570_s10, %s570_s10 }
  0x6f   : > { %p2638_p9 = scmp.ne.s32.totalorder %s570_s10, %s2637_s24  ;;  %p2646_p12 = scmp.lt.s32.totalorder %s2637_s24, %s2637_s24 }
  0x71   : > { %p2640_p4 = pnand %p2638_p9, %p3075_p8  ;;  %p2647_p1 = por %p2646_p12, %p2645_p11 }
  0x73   : > { %p2641_p10 = pneg %p2640_p4 }
  0x75   : > { %p2648_p3 = pnand %p2647_p1, %p2641_p10 }
  0x77   : > { %2651 = shalt.err (!%p2648_p3)
}
  0x78   : > { %2381 = dma.hbm_to_vmem [thread:$0]  (!%p3059_p6), %s3507_s13, 1024, %s570_s10, [#allocation15], %s2913_s17, %s2913_s17, %s2914_s14  }
  0x79   : > { %s2652_s25 = scalar_lea.hbm %s3497_s3, 1024 }
  0x7a   : > { %p2653_p1 = scmp.ne.s32.totalorder %s3497_s3, %s2652_s25  ;;  %p2659_p0 = scmp.lt.u32.totalorder %s2652_s25, %s3497_s3 }
  0x7c   : > { %p2655_p3 = pnand %p2653_p1, %p3075_p8 }
  0x7e   : > { %p2656_p13 = pneg %p2655_p3 }
  0x80   : > { %p2661_p2 = pnand %p2659_p0, %p2656_p13 }
  0x82   : > { %2664 = shalt.err (!%p2661_p2)
}
  0x83   : > { %s2665_s19 = scalar_lea.vmem %s490_s18, 1024  ;;  %p2673_p4 = scmp.lt.s32.totalorder %s490_s18, %s490_s18 }
  0x84   : > { %p2666_p5 = scmp.ne.s32.totalorder %s490_s18, %s2665_s19  ;;  %p2674_p10 = scmp.lt.s32.totalorder %s2665_s19, %s2665_s19 }
  0x86   : > { %p2668_p7 = pnand %p2666_p5, %p3075_p8  ;;  %p2675_p11 = por %p2674_p10, %p2673_p4 }
  0x88   : > { %p2669_p9 = pneg %p2668_p7 }
  0x8a   : > { %p2676_p12 = pnand %p2675_p11, %p2669_p9 }
  0x8c   : > { %2679 = shalt.err (!%p2676_p12)
}
  0x8d   : > { %2366 = dma.hbm_to_vmem [thread:$0]  (!%p3059_p6), %s3497_s3, 1024, %s490_s18, [#allocation6], %s2913_s17, %s2913_s17, %s2914_s14  }
  0x8e   : > { %s2917_s0 = smov [#allocation10]   ;;  %s2918_s8 = smov [#allocation13]  }
  0x8f   : > { %s521_s6 = sshll.u32 %s2917_s0, 4  ;;  %s553_s12 = sshll.u32 %s2918_s8, 4  ;;  %s522_s6 = int_to_ptr.vmem [resolvable:$true] %s521_s6  ;;  %s554_s12 = int_to_ptr.vmem [resolvable:$true] %s553_s12 }
  0x90   : > { %s2680_s23 = scalar_lea.hbm %s3501_s7, 1024 }
  0x91   : > { %p2681_p1 = scmp.ne.s32.totalorder %s3501_s7, %s2680_s23  ;;  %p2687_p0 = scmp.lt.u32.totalorder %s2680_s23, %s3501_s7 }
  0x93   : > { %p2683_p3 = pnand %p2681_p1, %p3075_p8 }
  0x95   : > { %p2684_p13 = pneg %p2683_p3 }
  0x97   : > { %p2689_p2 = pnand %p2687_p0, %p2684_p13 }
  0x99   : > { %2692 = shalt.err (!%p2689_p2)
}
  0x9a   : > { %s2693_s18 = scalar_lea.vmem %s522_s6, 1024  ;;  %p2701_p4 = scmp.lt.s32.totalorder %s522_s6, %s522_s6 }
  0x9b   : > { %p2694_p5 = scmp.ne.s32.totalorder %s522_s6, %s2693_s18  ;;  %p2702_p10 = scmp.lt.s32.totalorder %s2693_s18, %s2693_s18 }
  0x9d   : > { %p2696_p7 = pnand %p2694_p5, %p3075_p8  ;;  %p2703_p11 = por %p2702_p10, %p2701_p4 }
  0x9f   : > { %p2697_p9 = pneg %p2696_p7 }
  0xa1   : > { %p2704_p12 = pnand %p2703_p11, %p2697_p9 }
  0xa3   : > { %2707 = shalt.err (!%p2704_p12)
}
  0xa4   : > { %2372 = dma.hbm_to_vmem [thread:$0]  (!%p3059_p6), %s3501_s7, 1024, %s522_s6, [#allocation9], %s2913_s17, %s2913_s17, %s2914_s14  }
  0xa5   : > { %s2708_s26 = scalar_lea.hbm %s3505_s11, 1024 }
  0xa6   : > { %p2709_p1 = scmp.ne.s32.totalorder %s3505_s11, %s2708_s26  ;;  %p2715_p0 = scmp.lt.u32.totalorder %s2708_s26, %s3505_s11 }
  0xa8   : > { %p2711_p3 = pnand %p2709_p1, %p3075_p8 }
  0xaa   : > { %p2712_p13 = pneg %p2711_p3 }
  0xac   : > { %p2717_p2 = pnand %p2715_p0, %p2712_p13 }
  0xae   : > { %2720 = shalt.err (!%p2717_p2)
}
  0xaf   : > { %s2721_s10 = scalar_lea.vmem %s554_s12, 1024  ;;  %p2729_p4 = scmp.lt.s32.totalorder %s554_s12, %s554_s12 }
  0xb0   : > { %p2722_p5 = scmp.ne.s32.totalorder %s554_s12, %s2721_s10  ;;  %p2730_p10 = scmp.lt.s32.totalorder %s2721_s10, %s2721_s10 }
  0xb2   : > { %p2724_p7 = pnand %p2722_p5, %p3075_p8  ;;  %p2731_p11 = por %p2730_p10, %p2729_p4 }
  0xb4   : > { %p2725_p9 = pneg %p2724_p7 }
  0xb6   : > { %p2732_p12 = pnand %p2731_p11, %p2725_p9 }
  0xb8   : > { %2735 = shalt.err (!%p2732_p12)
}
  0xb9   : > { %2378 = dma.hbm_to_vmem [thread:$0]  (!%p3059_p6), %s3505_s11, 1024, %s554_s12, [#allocation12], %s2913_s17, %s2913_s17, %s2914_s14  }
  0xba   : > { %s2919_s24 = smov [#allocation16]   ;;  %s2736_s26 = scalar_lea.hbm %s3509_s15, 1024 }
  0xbb   : > { %s585_s0 = sshll.u32 %s2919_s24, 4  ;;  %p2737_p1 = scmp.ne.s32.totalorder %s3509_s15, %s2736_s26  ;;  %s586_s0 = int_to_ptr.vmem [resolvable:$true] %s585_s0 }
  0xbc   : > { %p2743_p0 = scmp.lt.u32.totalorder %s2736_s26, %s3509_s15 }
  0xbd   : > { %p2739_p3 = pnand %p2737_p1, %p3075_p8 }
  0xbf   : > { %p2740_p13 = pneg %p2739_p3 }
  0xc1   : > { %p2745_p2 = pnand %p2743_p0, %p2740_p13 }
  0xc3   : > { %2748 = shalt.err (!%p2745_p2)
}
  0xc4   : > { %s2749_s12 = scalar_lea.vmem %s586_s0, 1024  ;;  %p2757_p4 = scmp.lt.s32.totalorder %s586_s0, %s586_s0 }
  0xc5   : > { %p2750_p5 = scmp.ne.s32.totalorder %s586_s0, %s2749_s12  ;;  %p2758_p10 = scmp.lt.s32.totalorder %s2749_s12, %s2749_s12 }
  0xc7   : > { %p2752_p7 = pnand %p2750_p5, %p3075_p8  ;;  %p2759_p11 = por %p2758_p10, %p2757_p4 }
  0xc9   : > { %p2753_p9 = pneg %p2752_p7 }
  0xcb   : > { %p2760_p12 = pnand %p2759_p11, %p2753_p9 }
  0xcd   : > { %2763 = shalt.err (!%p2760_p12)
}
  0xce   : > { %2384 = dma.hbm_to_vmem [thread:$0]  (!%p3059_p6), %s3509_s15, 1024, %s586_s0, [#allocation15], %s2913_s17, %s2913_s17, %s2914_s14  }
  0xcf   : > { %s1973_s2 = sadd.s32 4294967294, %s2908_s30   ;;  %s3258_s21 = sadd.s32 1, %s2908_s30  }
  0xd0   : > { %s46_s18 = ssub.s32 %s2908_s30, %s3258_s21  ;;  %s49_s24 = sadd.s32 1, %s2904_s29 }
  0xd1   : > { %p47_p8 = scmp.eq.s32.totalorder %s46_s18, 0  ;;  %p56_p1 = scmp.ne.s32.totalorder %s2904_s29, %s2900_s28 }
  0xd2   : > { %p57_p3 = scmp.eq.s32.totalorder %s2908_s30, 0  ;;  %p62_p13 = scmp.ne.s32.totalorder %s2900_s28, %s2896_s27 }
  0xd3   : > { %s3269_s8 = scalar_select %p47_p8, %s2904_s29, %s49_s24  }
  0xd4   : > { %p3271_p0 = por %p57_p3, %p56_p1  ;;  %p3539_p2 = scmp.eq.s32.totalorder %s3043_s1, 0 }
  0xd5   : > { %p422_p5 = scmp.eq.s32.totalorder %s3043_s1, 1  ;;  %p428_p7 = scmp.eq.s32.totalorder %s1973_s2, 1 }
  0xd6   : > { %p3277_p6 = por %p3539_p2, %p62_p13  ;;  %p2404_p9 = scmp.lt.s32.totalorder %s2908_s30, 2 }
  0xd7   : > { %s602_s14 = sand.u32 1, %s2904_s29   ;;  %p3284_p4 = por %p422_p5, %p56_p1 }
  0xd8   : > { %p3288_p10 = por %p428_p7, %p62_p13  ;;  %s1984_s23 = sshll.u32 %s602_s14, 5 }
  0xd9   : > { %s3541_s0 = scalar_select %p3284_p4, 1, 0 }
  0xda   : > { %s3542_s26 = scalar_select %p3288_p10, 1, 0 }
  0xdb   : > { %s2079_s16 = sshll.u32 %s2908_s30, 9  ;;  %s3543_s12 = sld [smem:[#allocation27_spill]] }
  0xdc   : > { %s606_s6 = scalar_lea.vmem [#allocation2], %s1984_s23  ;;  %p3302_p11 = pnand %p2404_p9, %p3271_p0 }
  0xdd   : > { %s613_s2 = sshll.u32 %s606_s6, 4  ;;  %s3306_s24 = scalar_lea.sflag [#allocation3], %s602_s14  ;;  %s3298_s2 = int_to_ptr.vmem [resolvable:$true] %s613_s2 }
  0xde   : > { %p2766_p8 = pneg %p3302_p11 }
  0xe1   : > { %s3296_s10 = scalar_lea.hbm %s3543_s12, %s2079_s16  ;;  %s2769_s25 = scalar_lea.hbm %s3543_s12, 1024 }
  0xe2   : > { %s2764_s22 = scalar_lea.hbm %s3296_s10, 512  ;;  %p2770_p13 = scmp.lt.u32.totalorder %s3296_s10, %s3543_s12 }
  0xe3   : > { %p2765_p12 = scmp.ne.s32.totalorder %s3296_s10, %s2764_s22  ;;  %p2771_p0 = scmp.lt.u32.totalorder %s2769_s25, %s2764_s22 }
  0xe4   : > { %p2773_p5 = scmp.lt.u32.totalorder %s2764_s22, %s3296_s10 }
  0xe5   : > { %p2767_p1 = pnand %p2766_p8, %p2765_p12  ;;  %p2772_p2 = por %p2771_p0, %p2770_p13 }
  0xe7   : > { %p2768_p3 = pneg %p2767_p1  ;;  %p2774_p7 = por %p2773_p5, %p2772_p2 }
  0xe9   : > { %p2775_p9 = pnand %p2774_p7, %p2768_p3 }
  0xeb   : > { %2778 = shalt.err (!%p2775_p9)
}
  0xec   : > { %s2779_s14 = scalar_lea.vmem %s3298_s2, 512  ;;  %s2920_s23 = smov [#allocation2]  }
  0xed   : > { %p2780_p12 = scmp.ne.s32.totalorder %s3298_s2, %s2779_s14  ;;  %s2784_s16 = sshll.u32 %s2920_s23, 4  ;;  %s2785_s16 = int_to_ptr.vmem [resolvable:$false] %s2784_s16 }
  0xee   : > { %s2786_s19 = scalar_lea.vmem %s2785_s16, 1024  ;;  %p2787_p4 = scmp.lt.s32.totalorder %s3298_s2, %s2785_s16 }
  0xef   : > { %p2782_p1 = pnand %p2780_p12, %p2766_p8  ;;  %p2788_p13 = scmp.lt.s32.totalorder %s2786_s19, %s2779_s14 }
  0xf1   : > { %p2783_p10 = pneg %p2782_p1  ;;  %p2789_p0 = por %p2788_p13, %p2787_p4 }
  0xf3   : > { %p2790_p2 = pnand %p2789_p0, %p2783_p10 }
  0xf5   : > { %2793 = shalt.err (!%p2790_p2)
}
  0xf6   : > { %s2921_s22 = smov 128   ;;  %s2922_s25 = smov 8  }
  0xf7   : > { %2388 = dma.hbm_to_vmem [thread:$0]  (!%p3302_p11), %s3296_s10, 512, %s3298_s2, %s3306_s24, %s2921_s22, %s2921_s22, %s2922_s25  }
  0xf8   : > { %p3545_p8 = scmp.ne.s32.totalorder %s3534_s20, 0 }
  0xf9   : > { %s3337_s6 = sand.u32 (!%p3545_p8), 1, %s2900_s28  }
  0xfa   : > { %625 = sbr.rel (%p3545_p8) target bundleno = 2116 (0x844), region = 88  ;;  %s3340_s14 = sshll.u32 (!%p3545_p8), %s3337_s6, 5 }
  0xfb   : > { %s628_s23 = scalar_lea.sflag (!%p3545_p8), [#allocation3], %s3337_s6  ;;  %s3344_s16 = scalar_lea.vmem (!%p3545_p8), [#allocation2], %s3340_s14 }
 0x101   : > { %2867 = dma.done.wait (%p3277_p6), %s628_s23, 512  }
 0x102   : > { %2869 = vsyncadd (%p3277_p6), %s628_s23, 4294966784  ;;  %p3546_p4 = scmp.eq.s32.totalorder %s3043_s1, 0 }
 0x104   : > { %2871 = dma.done.wait (%p3546_p4), [#allocation6], 2048   ;;  %p3547_p10 = pmov %p3546_p4 }
 0x105   : > { %p3548_p11 = pmov %p3546_p4 }
 0x106   : > { %2873 = vsyncadd (%p3547_p10), [#allocation6], 4294965248 }
 0x107   : > { %2875 = dma.done.wait (%p3548_p11), [#allocation9], 2048   ;;  %p3549_p3 = pmov %p3546_p4 }
 0x109   : > { %2877 = vsyncadd (%p3549_p3), [#allocation9], 4294965248  ;;  %p3550_p5 = pmov %p3549_p3 }
 0x10a   : > { %p3551_p7 = pmov %p3549_p3 }
 0x10b   : > { %2879 = dma.done.wait (%p3550_p5), [#allocation12], 2048  }
 0x10c   : > { %2881 = vsyncadd (%p3551_p7), [#allocation12], 4294965248  ;;  %p3552_p6 = pmov %p3549_p3 }
 0x10d   : > { %p3553_p9 = pmov %p3549_p3 }
 0x10e   : > { %2883 = dma.done.wait (%p3552_p6), [#allocation15], 2048  }
 0x10f   : > { %2885 = vsyncadd (%p3553_p9), [#allocation15], 4294965248  ;;  %v2460_v0 = vld [vmem:[#allocation5] sm:$0xff]   ;;  %v2461_v1 = vld [vmem:[#allocation5 + $0x8] sm:$0xff]   ;;  %s3554_s10 = sld [smem:[#allocation29_spill]]  ;;  %s3555_s22 = sld [smem:[#allocation30_spill]] }
 0x110   : > { %2162 = vmatprep.subr.bf16.mxu0 %v2460_v0  ;;  %v2462_v2 = vld [vmem:[#allocation5 + $0x10] sm:$0xff]   ;;  %v2463_v3 = vld [vmem:[#allocation5 + $0x18] sm:$0xff]   ;;  %v725_v4 = vld [vmem:[%s3344_s16] sm:$0xff]  ;;  %s3383_s20 = scalar_lea.vmem [#allocation17], %s3340_s14  ;;  %s3557_s2 = sld [smem:[#allocation32_spill]] }
 0x111   : > { %2163 = vmatpush3.bf16.msra.mxu0 %v2460_v0  ;;  %v726_v5 = vld [vmem:[%s3344_s16 + $0x8] sm:$0xff]  ;;  %v2468_v7 = vld [vmem:[#allocation7] sm:$0xff]   ;;  %v2470_v10 = vld [vmem:[#allocation7 + $0x10] sm:$0xff]   ;;  %s3558_s19 = sld [smem:[#allocation33_spill]]  ;;  %s3559_s23 = sld [smem:[#allocation34_spill]] }
 0x112   : > { %2164 = vmatprep.subr.bf16.mxu0 %v2461_v1  ;;  %v729_v6 = vpack.c.bf16 %v726_v5, %v725_v4  ;;  %v2469_v8 = vld [vmem:[#allocation7 + $0x8] sm:$0xff]   ;;  %v2464_v9 = vld [vmem:[#allocation5 + $0x20] sm:$0xff]   ;;  %2182 = vmatprep.subr.bf16.mxu1 %v2468_v7  ;;  %v2471_v12 = vld [vmem:[#allocation7 + $0x18] sm:$0xff]   ;;  %s3521_s17 = sshll.u32 %s3043_s1, 9  ;;  %s3560_s18 = sld [smem:[#allocation36_spill]] }
 0x113   : > { %2183 = vmatpush3.bf16.msra.mxu1 %v2468_v7  ;;  %v2465_v11 = vld [vmem:[#allocation5 + $0x28] sm:$0xff]   ;;  %v2466_v13 = vld [vmem:[#allocation5 + $0x30] sm:$0xff]   ;;  %v2472_v14 = vld [vmem:[#allocation7 + $0x20] sm:$0xff]   ;;  %p3561_p1 = scmp.ne.s32.totalorder %s3541_s0, 0  ;;  %s2923_s25 = smov [#allocation17]  }
 0x114   : > { %2178 = vmatprep.mubr.bf16.mxu0 %v729_v6  ;;  %2184 = vmatprep.subr.bf16.mxu1 %v2469_v8  ;;  %v2467_v15 = vld [vmem:[#allocation5 + $0x38] sm:$0xff]   ;;  %v2473_v16 = vld [vmem:[#allocation7 + $0x28] sm:$0xff]   ;;  %v727_v17 = vld [vmem:[%s3344_s16 + $0x10] sm:$0xff] }
 0x115   : > { %2165 = vmatpush3.bf16.msra.mxu0 %v2461_v1  ;;  %v728_v18 = vld [vmem:[%s3344_s16 + $0x18] sm:$0xff]  ;;  %v2474_v20 = vld [vmem:[#allocation7 + $0x30] sm:$0xff]   ;;  %v2476_v22 = vld [vmem:[#allocation8] sm:$0xff]   ;;  %s3556_s16 = sld [smem:[#allocation31_spill]] }
 0x116   : > { %2166 = vmatprep.subr.bf16.mxu0 %v2462_v2  ;;  %v730_v19 = vpack.c.bf16 %v728_v18, %v727_v17  ;;  %v2475_v21 = vld [vmem:[#allocation7 + $0x38] sm:$0xff]   ;;  %v2477_v23 = vld [vmem:[#allocation8 + $0x8] sm:$0xff]   ;;  %v2478_v24 = vld [vmem:[#allocation8 + $0x10] sm:$0xff]  }
 0x117   : > { %2185 = vmatpush3.bf16.msra.mxu1 %v2469_v8  ;;  %v2479_v25 = vld [vmem:[#allocation8 + $0x18] sm:$0xff]   ;;  %v2480_v26 = vld [vmem:[#allocation8 + $0x20] sm:$0xff]   ;;  %v2481_v27 = vld [vmem:[#allocation8 + $0x28] sm:$0xff]  }
 0x118   : > { %2186 = vmatprep.subr.bf16.mxu1 %v2470_v10  ;;  %v1999_v28 = vld [vmem:[%s3554_s10] ss:$0 sm:$0xff]  ;;  %v2482_v43 = vld [vmem:[#allocation8 + $0x30] sm:$0xff]   ;;  %v2483_v44 = vld [vmem:[#allocation8 + $0x38] sm:$0xff]   ;;  %s3407_s24 = scalar_lea.hbm %s3560_s18, %s3521_s17 }
 0x119   : > { %2167 = vmatpush3.bf16.msra.mxu0 %v2462_v2  ;;  %v2484_v45 = vld [vmem:[#allocation10] sm:$0xff]   ;;  %v2485_v46 = vld [vmem:[#allocation10 + $0x8] sm:$0xff]   ;;  %v2486_v47 = vld [vmem:[#allocation10 + $0x10] sm:$0xff]  }
 0x11a   : > { %2168 = vmatprep.subr.bf16.mxu0 %v2463_v3  ;;  %v2487_v48 = vld [vmem:[#allocation10 + $0x18] sm:$0xff]   ;;  %v2488_v49 = vld [vmem:[#allocation10 + $0x20] sm:$0xff]   ;;  %v2489_v50 = vld [vmem:[#allocation10 + $0x28] sm:$0xff]  }
 0x11b   : > { %2187 = vmatpush3.bf16.msra.mxu1 %v2470_v10  ;;  %v2008_v51 = vld [vmem:[%s3498_s4] ss:$0 sm:$0xff]  ;;  %v2490_v2 = vld [vmem:[#allocation10 + $0x30] sm:$0xff]   ;;  %v2493_v5 = vld [vmem:[#allocation11 + $0x8] sm:$0xff]  }
 0x11c   : > { %2188 = vmatprep.subr.bf16.mxu1 %v2471_v12  ;;  %v2492_v4 = vld [vmem:[#allocation11] sm:$0xff]   ;;  %v2494_v6 = vld [vmem:[#allocation11 + $0x10] sm:$0xff]   ;;  %v2495_v7 = vld [vmem:[#allocation11 + $0x18] sm:$0xff]  }
 0x11d   : > { %2169 = vmatpush3.bf16.msra.mxu0 %v2463_v3  ;;  %v2491_v3 = vld [vmem:[#allocation10 + $0x38] sm:$0xff]   ;;  %v2496_v8 = vld [vmem:[#allocation11 + $0x20] sm:$0xff]  }
 0x11e   : > { %2170 = vmatprep.subr.bf16.mxu0 %v2464_v9  ;;  %v2017_v10 = vld [vmem:[%s3555_s22] ss:$0 sm:$0xff] }
 0x11f   : > { %2189 = vmatpush3.bf16.msra.mxu1 %v2471_v12 }
 0x120   : > { %2190 = vmatprep.subr.bf16.mxu1 %v2472_v14 }
 0x121   : > { %2171 = vmatpush3.bf16.msra.mxu0 %v2464_v9  ;;  %v2497_v9 = vld [vmem:[#allocation11 + $0x28] sm:$0xff]  }
 0x122   : > { %2172 = vmatprep.subr.bf16.mxu0 %v2465_v11 }
 0x123   : > { %2191 = vmatpush3.bf16.msra.mxu1 %v2472_v14 }
 0x124   : > { %2192 = vmatprep.subr.bf16.mxu1 %v2473_v16 }
 0x125   : > { %2173 = vmatpush3.bf16.msra.mxu0 %v2465_v11 }
 0x126   : > { %2174 = vmatprep.subr.bf16.mxu0 %v2466_v13 }
 0x127   : > { %2193 = vmatpush3.bf16.msra.mxu1 %v2473_v16 }
 0x128   : > { %2194 = vmatprep.subr.bf16.mxu1 %v2474_v20 }
 0x129   : > { %2175 = vmatpush3.bf16.msra.mxu0 %v2466_v13 }
 0x12a   : > { %2176 = vmatprep.subr.bf16.mxu0 %v2467_v15 }
 0x12b   : > { %2195 = vmatpush3.bf16.msra.mxu1 %v2474_v20 }
 0x12c   : > { %2196 = vmatprep.subr.bf16.mxu1 %v2475_v21 }
 0x12d   : > { %2177 = vmatpush3.bf16.msra.mxu0 %v2467_v15 }
 0x12e   : > { %2202 = vmatprep.subr.bf16.mxu0 %v2476_v22 }
 0x12f   : > { %2197 = vmatpush3.bf16.msra.mxu1 %v2475_v21 }
 0x130   : > { %2179 = vmatmul.mubr.bf16.vlgmr.msra.gmra.mrb[0].mxu0 %v730_v19  ;;  %2222 = vmatprep.subr.bf16.mxu1 %v2484_v45 }
 0x131   : > { %2203 = vmatpush3.bf16.msra.mxu0 %v2476_v22 }
 0x132   : > { %2204 = vmatprep.subr.bf16.mxu0 %v2477_v23 }
 0x135   : > { %2205 = vmatpush3.bf16.msra.mxu0 %v2477_v23 }
 0x136   : > { %2206 = vmatprep.subr.bf16.mxu0 %v2478_v24 }
 0x139   : > { %2207 = vmatpush3.bf16.msra.mxu0 %v2478_v24 }
 0x13a   : > { %2208 = vmatprep.subr.bf16.mxu0 %v2479_v25 }
 0x13d   : > { %2209 = vmatpush3.bf16.msra.mxu0 %v2479_v25  ;;  %v2498_v25 = vld [vmem:[#allocation11 + $0x30] sm:$0xff]  }
 0x13e   : > { %2210 = vmatprep.subr.bf16.mxu0 %v2480_v26 }
 0x141   : > { %2211 = vmatpush3.bf16.msra.mxu0 %v2480_v26  ;;  %v2499_v26 = vld [vmem:[#allocation11 + $0x38] sm:$0xff]  }
 0x142   : > { %2212 = vmatprep.subr.bf16.mxu0 %v2481_v27 }
 0x145   : > { %2213 = vmatpush3.bf16.msra.mxu0 %v2481_v27  ;;  %v2500_v27 = vld [vmem:[#allocation13] sm:$0xff]  }
 0x146   : > { %2214 = vmatprep.subr.bf16.mxu0 %v2482_v43 }
 0x149   : > { %2215 = vmatpush3.bf16.msra.mxu0 %v2482_v43 }
 0x14a   : > { %2216 = vmatprep.subr.bf16.mxu0 %v2483_v44 }
 0x14d   : > { %2217 = vmatpush3.bf16.msra.mxu0 %v2483_v44  ;;  %v2506_v44 = vld [vmem:[#allocation13 + $0x30] sm:$0xff]  }
 0x14e   : > { %2242 = vmatprep.subr.bf16.mxu0 %v2492_v4 }
 0x203   : > { %v2180_v29 = vpop.f32.mrb[0].mxu0 }
 0x204   : > { %v845_v30 = vadd.f32 %v2180_v29, %v1999_v28  ;;  %v836_v31 = vpop.f32.mrb[1].mxu0  ;;  %v2502_v29 = vld [vmem:[#allocation13 + $0x10] sm:$0xff]  }
 0x205   : > { %v837_v32 = vadd.f32 %v1999_v28, %v836_v31  ;;  %v2181_v33 = vpop.f32.mrb[2].mxu0  ;;  %v2504_v31 = vld [vmem:[#allocation13 + $0x20] sm:$0xff]  }
 0x206   : > { %v848_v34 = vadd.f32 %v2181_v33, %v1999_v28  ;;  %v839_v35 = vpop.f32.mrb[3].mxu0  ;;  %v853_v37 = vmax.f32 %v845_v30, 0.0  ;;  %v2503_v30 = vld [vmem:[#allocation13 + $0x18] sm:$0xff]   ;;  %v2026_v33 = vld [vmem:[%s3556_s16] ss:$0 sm:$0xff]  ;;  %s1776_s16 = sshll.u32 %s3383_s20, 4  ;;  %s3399_s16 = int_to_ptr.vmem [resolvable:$true] %s1776_s16 }
 0x207   : > { %v840_v36 = vadd.f32 %v1999_v28, %v839_v35  ;;  %v851_v39 = vmax.f32 %v837_v32, 0.0  ;;  %v2501_v28 = vld [vmem:[#allocation13 + $0x8] sm:$0xff]   ;;  %s2794_s22 = scalar_lea.vmem %s3399_s16, 512 }
 0x208   : > { %v854_v38 = vmax.f32 %v848_v34, 0.0  ;;  %v2505_v32 = vld [vmem:[#allocation13 + $0x28] sm:$0xff]   ;;  %p2795_p12 = scmp.ne.s32.totalorder %s3399_s16, %s2794_s22 }
 0x209   : > { %v852_v40 = vmax.f32 %v840_v36, 0.0 }
 0x20a   : > { %v856_v41 = vpack.c.bf16 %v854_v38, %v853_v37  ;;  %p2796_p13 = pnand %p2795_p12, %p3561_p1 }
 0x20b   : > { %v855_v42 = vpack.c.bf16 %v852_v40, %v851_v39 }
 0x20c   : > { %p2797_p0 = pneg %p2796_p13 }
 0x20d   : > { %2198 = vmatprep.mubr.bf16.mxu1 %v855_v42 }
 0x20e   : > { %2199 = vmatmul.mubr.bf16.vlgmr.msra.gmra.mrb[0].mxu1 %v856_v41 }
 0x20f   : > { %2223 = vmatpush3.bf16.msra.mxu1 %v2484_v45  ;;  %v2507_v45 = vld [vmem:[#allocation13 + $0x38] sm:$0xff]  }
 0x210   : > { %2224 = vmatprep.subr.bf16.mxu1 %v2485_v46 }
 0x213   : > { %2225 = vmatpush3.bf16.msra.mxu1 %v2485_v46  ;;  %v2508_v46 = vld [vmem:[#allocation14] sm:$0xff]  }
 0x214   : > { %2226 = vmatprep.subr.bf16.mxu1 %v2486_v47 }
 0x217   : > { %2227 = vmatpush3.bf16.msra.mxu1 %v2486_v47  ;;  %v2509_v47 = vld [vmem:[#allocation14 + $0x8] sm:$0xff]  }
 0x218   : > { %2228 = vmatprep.subr.bf16.mxu1 %v2487_v48 }
 0x21b   : > { %2229 = vmatpush3.bf16.msra.mxu1 %v2487_v48  ;;  %v2510_v48 = vld [vmem:[#allocation14 + $0x10] sm:$0xff]  }
 0x21c   : > { %2230 = vmatprep.subr.bf16.mxu1 %v2488_v49 }
 0x21f   : > { %2231 = vmatpush3.bf16.msra.mxu1 %v2488_v49  ;;  %v2511_v49 = vld [vmem:[#allocation14 + $0x18] sm:$0xff]  }
 0x220   : > { %2232 = vmatprep.subr.bf16.mxu1 %v2489_v50 }
 0x223   : > { %2233 = vmatpush3.bf16.msra.mxu1 %v2489_v50  ;;  %v2512_v50 = vld [vmem:[#allocation14 + $0x20] sm:$0xff]  }
 0x224   : > { %2234 = vmatprep.subr.bf16.mxu1 %v2490_v2 }
 0x227   : > { %2235 = vmatpush3.bf16.msra.mxu1 %v2490_v2 }
 0x228   : > { %2236 = vmatprep.subr.bf16.mxu1 %v2491_v3 }
 0x22b   : > { %2237 = vmatpush3.bf16.msra.mxu1 %v2491_v3  ;;  %v2514_v3 = vld [vmem:[#allocation14 + $0x30] sm:$0xff]  }
 0x22c   : > { %2262 = vmatprep.subr.bf16.mxu1 %v2500_v27 }
 0x2e1   : > { %v2200_v52 = vpop.f32.mrb[0].mxu1 }
 0x2e2   : > { %v971_v53 = vadd.f32 %v2200_v52, %v2008_v51  ;;  %v962_v54 = vpop.f32.mrb[1].mxu1  ;;  %v2035_v52 = vld [vmem:[%s3557_s2] ss:$0 sm:$0xff] }
 0x2e3   : > { %v963_v55 = vadd.f32 %v2008_v51, %v962_v54  ;;  %v2201_v56 = vpop.f32.mrb[2].mxu1 }
 0x2e4   : > { %v974_v57 = vadd.f32 %v2201_v56, %v2008_v51  ;;  %v965_v58 = vpop.f32.mrb[3].mxu1  ;;  %v979_v60 = vmax.f32 %v971_v53, 0.0 }
 0x2e5   : > { %v966_v59 = vadd.f32 %v2008_v51, %v965_v58  ;;  %v977_v62 = vmax.f32 %v963_v55, 0.0  ;;  %v2513_v51 = vld [vmem:[#allocation14 + $0x28] sm:$0xff]  }
 0x2e6   : > { %v980_v61 = vmax.f32 %v974_v57, 0.0 }
 0x2e7   : > { %v978_v63 = vmax.f32 %v966_v59, 0.0 }
 0x2e8   : > { %v982_v0 = vpack.c.bf16 %v980_v61, %v979_v60 }
 0x2e9   : > { %v981_v1 = vpack.c.bf16 %v978_v63, %v977_v62 }
 0x2eb   : > { %2218 = vmatprep.mubr.bf16.mxu0 %v981_v1 }
 0x2ec   : > { %2219 = vmatmul.mubr.bf16.vlgmr.msra.gmra.mrb[4].mxu0 %v982_v0 }
 0x2ed   : > { %2243 = vmatpush3.bf16.msra.mxu0 %v2492_v4  ;;  %v2515_v4 = vld [vmem:[#allocation14 + $0x38] sm:$0xff]  }
 0x2ee   : > { %2244 = vmatprep.subr.bf16.mxu0 %v2493_v5 }
 0x2f1   : > { %2245 = vmatpush3.bf16.msra.mxu0 %v2493_v5  ;;  %v2516_v5 = vld [vmem:[#allocation16] sm:$0xff]  }
 0x2f2   : > { %2246 = vmatprep.subr.bf16.mxu0 %v2494_v6 }
 0x2f5   : > { %2247 = vmatpush3.bf16.msra.mxu0 %v2494_v6  ;;  %v2517_v6 = vld [vmem:[#allocation16 + $0x8] sm:$0xff]  }
 0x2f6   : > { %2248 = vmatprep.subr.bf16.mxu0 %v2495_v7 }
 0x2f9   : > { %2249 = vmatpush3.bf16.msra.mxu0 %v2495_v7  ;;  %v2518_v7 = vld [vmem:[#allocation16 + $0x10] sm:$0xff]  }
 0x2fa   : > { %2250 = vmatprep.subr.bf16.mxu0 %v2496_v8 }
 0x2fd   : > { %2251 = vmatpush3.bf16.msra.mxu0 %v2496_v8  ;;  %v2519_v8 = vld [vmem:[#allocation16 + $0x18] sm:$0xff]  }
 0x2fe   : > { %2252 = vmatprep.subr.bf16.mxu0 %v2497_v9 }
 0x301   : > { %2253 = vmatpush3.bf16.msra.mxu0 %v2497_v9  ;;  %v2520_v9 = vld [vmem:[#allocation16 + $0x20] sm:$0xff]  }
 0x302   : > { %2254 = vmatprep.subr.bf16.mxu0 %v2498_v25 }
 0x305   : > { %2255 = vmatpush3.bf16.msra.mxu0 %v2498_v25 }
 0x306   : > { %2256 = vmatprep.subr.bf16.mxu0 %v2499_v26 }
 0x309   : > { %2257 = vmatpush3.bf16.msra.mxu0 %v2499_v26  ;;  %v2522_v26 = vld [vmem:[#allocation16 + $0x30] sm:$0xff]  }
 0x30a   : > { %2282 = vmatprep.subr.bf16.mxu0 %v2508_v46 }
 0x3bf   : > { %v2220_v11 = vpop.f32.mrb[4].mxu0 }
 0x3c0   : > { %v1097_v12 = vadd.f32 %v2220_v11, %v2017_v10  ;;  %v1088_v13 = vpop.f32.mrb[5].mxu0  ;;  %v2044_v11 = vld [vmem:[%s3558_s19] ss:$0 sm:$0xff] }
 0x3c1   : > { %v1089_v14 = vadd.f32 %v2017_v10, %v1088_v13  ;;  %v2221_v15 = vpop.f32.mrb[6].mxu0 }
 0x3c2   : > { %v1100_v16 = vadd.f32 %v2221_v15, %v2017_v10  ;;  %v1091_v17 = vpop.f32.mrb[7].mxu0  ;;  %v1105_v19 = vmax.f32 %v1097_v12, 0.0 }
 0x3c3   : > { %v1092_v18 = vadd.f32 %v2017_v10, %v1091_v17  ;;  %v1103_v21 = vmax.f32 %v1089_v14, 0.0  ;;  %v2521_v10 = vld [vmem:[#allocation16 + $0x28] sm:$0xff]  }
 0x3c4   : > { %v1106_v20 = vmax.f32 %v1100_v16, 0.0 }
 0x3c5   : > { %v1104_v22 = vmax.f32 %v1092_v18, 0.0 }
 0x3c6   : > { %v1108_v23 = vpack.c.bf16 %v1106_v20, %v1105_v19 }
 0x3c7   : > { %v1107_v24 = vpack.c.bf16 %v1104_v22, %v1103_v21 }
 0x3c9   : > { %2238 = vmatprep.mubr.bf16.mxu1 %v1107_v24 }
 0x3ca   : > { %2239 = vmatmul.mubr.bf16.vlgmr.msra.gmra.mrb[4].mxu1 %v1108_v23 }
 0x3cb   : > { %2263 = vmatpush3.bf16.msra.mxu1 %v2500_v27  ;;  %v2523_v27 = vld [vmem:[#allocation16 + $0x38] sm:$0xff]  }
 0x3cc   : > { %2264 = vmatprep.subr.bf16.mxu1 %v2501_v28 }
 0x3cf   : > { %2265 = vmatpush3.bf16.msra.mxu1 %v2501_v28  ;;  %v2053_v28 = vld [vmem:[%s3559_s23] ss:$0 sm:$0xff] }
 0x3d0   : > { %2266 = vmatprep.subr.bf16.mxu1 %v2502_v29 }
 0x3d3   : > { %2267 = vmatpush3.bf16.msra.mxu1 %v2502_v29 }
 0x3d4   : > { %2268 = vmatprep.subr.bf16.mxu1 %v2503_v30 }
 0x3d7   : > { %2269 = vmatpush3.bf16.msra.mxu1 %v2503_v30 }
 0x3d8   : > { %2270 = vmatprep.subr.bf16.mxu1 %v2504_v31 }
 0x3db   : > { %2271 = vmatpush3.bf16.msra.mxu1 %v2504_v31 }
 0x3dc   : > { %2272 = vmatprep.subr.bf16.mxu1 %v2505_v32 }
 0x3df   : > { %2273 = vmatpush3.bf16.msra.mxu1 %v2505_v32 }
 0x3e0   : > { %2274 = vmatprep.subr.bf16.mxu1 %v2506_v44 }
 0x3e3   : > { %2275 = vmatpush3.bf16.msra.mxu1 %v2506_v44 }
 0x3e4   : > { %2276 = vmatprep.subr.bf16.mxu1 %v2507_v45 }
 0x3e7   : > { %2277 = vmatpush3.bf16.msra.mxu1 %v2507_v45 }
 0x3e8   : > { %2302 = vmatprep.subr.bf16.mxu1 %v2516_v5 }
 0x49d   : > { %v2240_v34 = vpop.f32.mrb[4].mxu1 }
 0x49e   : > { %v1223_v35 = vadd.f32 %v2240_v34, %v2026_v33  ;;  %v1214_v36 = vpop.f32.mrb[5].mxu1 }
 0x49f   : > { %v1215_v37 = vadd.f32 %v2026_v33, %v1214_v36  ;;  %v2241_v38 = vpop.f32.mrb[6].mxu1 }
 0x4a0   : > { %1231 = vst [vmem:[%s3383_s20 + $0x10] sm:$0xff] %v1223_v35  ;;  %v1226_v39 = vadd.f32 %v2241_v38, %v2026_v33  ;;  %v1217_v40 = vpop.f32.mrb[7].mxu1 }
 0x4a1   : > { %1229 = vst [vmem:[%s3383_s20] sm:$0xff] %v1215_v37  ;;  %v1218_v41 = vadd.f32 %v2026_v33, %v1217_v40 }
 0x4a2   : > { %1232 = vst [vmem:[%s3383_s20 + $0x18] sm:$0xff] %v1226_v39  ;;  %v1234_v42 = vpack.c.bf16 %v1226_v39, %v1223_v35 }
 0x4a3   : > { %1230 = vst [vmem:[%s3383_s20 + $0x8] sm:$0xff] %v1218_v41  ;;  %v1233_v43 = vpack.c.bf16 %v1218_v41, %v1215_v37  ;;  %s2798_s20 = sshll.u32 %s2923_s25, 4  ;;  %s2799_s20 = int_to_ptr.vmem [resolvable:$false] %s2798_s20 }
 0x4a4   : > { %s2800_s23 = scalar_lea.vmem %s2799_s20, 1024  ;;  %p2801_p2 = scmp.lt.s32.totalorder %s3399_s16, %s2799_s20 }
 0x4a5   : > { %2258 = vmatprep.mubr.bf16.mxu0 %v1233_v43  ;;  %p2802_p8 = scmp.lt.s32.totalorder %s2800_s23, %s2794_s22 }
 0x4a6   : > { %2259 = vmatmul.mubr.bf16.vlgmr.msra.gmra.mrb[8].mxu0 %v1234_v42 }
 0x4a7   : > { %2283 = vmatpush3.bf16.msra.mxu0 %v2508_v46  ;;  %p2803_p4 = por %p2802_p8, %p2801_p2 }
 0x4a8   : > { %2284 = vmatprep.subr.bf16.mxu0 %v2509_v47 }
 0x4a9   : > { %p2804_p10 = pnand %p2803_p4, %p2797_p0 }
 0x4ab   : > { %2285 = vmatpush3.bf16.msra.mxu0 %v2509_v47 }
 0x4ac   : > { %2286 = vmatprep.subr.bf16.mxu0 %v2510_v48 }
 0x4af   : > { %2287 = vmatpush3.bf16.msra.mxu0 %v2510_v48 }
 0x4b0   : > { %2288 = vmatprep.subr.bf16.mxu0 %v2511_v49 }
 0x4b3   : > { %2289 = vmatpush3.bf16.msra.mxu0 %v2511_v49 }
 0x4b4   : > { %2290 = vmatprep.subr.bf16.mxu0 %v2512_v50 }
 0x4b7   : > { %2291 = vmatpush3.bf16.msra.mxu0 %v2512_v50 }
 0x4b8   : > { %2292 = vmatprep.subr.bf16.mxu0 %v2513_v51 }
 0x4bb   : > { %2293 = vmatpush3.bf16.msra.mxu0 %v2513_v51 }
 0x4bc   : > { %2294 = vmatprep.subr.bf16.mxu0 %v2514_v3 }
 0x4bf   : > { %2295 = vmatpush3.bf16.msra.mxu0 %v2514_v3 }
 0x4c0   : > { %2296 = vmatprep.subr.bf16.mxu0 %v2515_v4 }
 0x4c3   : > { %2297 = vmatpush3.bf16.msra.mxu0 %v2515_v4 }
 0x579   : > { %v2260_v53 = vpop.f32.mrb[8].mxu0 }
 0x57a   : > { %v1349_v54 = vadd.f32 %v2260_v53, %v2035_v52  ;;  %v1340_v55 = vpop.f32.mrb[9].mxu0 }
 0x57b   : > { %v1341_v56 = vadd.f32 %v2035_v52, %v1340_v55  ;;  %v2261_v57 = vpop.f32.mrb[10].mxu0 }
 0x57c   : > { %v1352_v58 = vadd.f32 %v2261_v57, %v2035_v52  ;;  %v1343_v59 = vpop.f32.mrb[11].mxu0  ;;  %v1357_v61 = vmax.f32 %v1349_v54, 0.0 }
 0x57d   : > { %v1344_v60 = vadd.f32 %v2035_v52, %v1343_v59  ;;  %v1355_v63 = vmax.f32 %v1341_v56, 0.0 }
 0x57e   : > { %v1358_v62 = vmax.f32 %v1352_v58, 0.0 }
 0x57f   : > { %v1356_v0 = vmax.f32 %v1344_v60, 0.0 }
 0x580   : > { %v1360_v1 = vpack.c.bf16 %v1358_v62, %v1357_v61 }
 0x581   : > { %v1359_v2 = vpack.c.bf16 %v1356_v0, %v1355_v63 }
 0x583   : > { %2278 = vmatprep.mubr.bf16.mxu1 %v1359_v2 }
 0x584   : > { %2279 = vmatmul.mubr.bf16.vlgmr.msra.gmra.mrb[8].mxu1 %v1360_v1 }
 0x585   : > { %2303 = vmatpush3.bf16.msra.mxu1 %v2516_v5 }
 0x586   : > { %2304 = vmatprep.subr.bf16.mxu1 %v2517_v6 }
 0x589   : > { %2305 = vmatpush3.bf16.msra.mxu1 %v2517_v6 }
 0x58a   : > { %2306 = vmatprep.subr.bf16.mxu1 %v2518_v7 }
 0x58d   : > { %2307 = vmatpush3.bf16.msra.mxu1 %v2518_v7 }
 0x58e   : > { %2308 = vmatprep.subr.bf16.mxu1 %v2519_v8 }
 0x591   : > { %2309 = vmatpush3.bf16.msra.mxu1 %v2519_v8 }
 0x592   : > { %2310 = vmatprep.subr.bf16.mxu1 %v2520_v9 }
 0x595   : > { %2311 = vmatpush3.bf16.msra.mxu1 %v2520_v9 }
 0x596   : > { %2312 = vmatprep.subr.bf16.mxu1 %v2521_v10 }
 0x599   : > { %2313 = vmatpush3.bf16.msra.mxu1 %v2521_v10 }
 0x59a   : > { %2314 = vmatprep.subr.bf16.mxu1 %v2522_v26 }
 0x59d   : > { %2315 = vmatpush3.bf16.msra.mxu1 %v2522_v26 }
 0x59e   : > { %2316 = vmatprep.subr.bf16.mxu1 %v2523_v27 }
 0x5a1   : > { %2317 = vmatpush3.bf16.msra.mxu1 %v2523_v27 }
 0x657   : > { %v2280_v12 = vpop.f32.mrb[8].mxu1 }
 0x658   : > { %v1475_v13 = vadd.f32 %v2280_v12, %v2044_v11  ;;  %v1466_v14 = vpop.f32.mrb[9].mxu1 }
 0x659   : > { %v1467_v15 = vadd.f32 %v2044_v11, %v1466_v14  ;;  %v2281_v16 = vpop.f32.mrb[10].mxu1 }
 0x65a   : > { %v1478_v17 = vadd.f32 %v2281_v16, %v2044_v11  ;;  %v1469_v18 = vpop.f32.mrb[11].mxu1  ;;  %v1483_v20 = vmax.f32 %v1475_v13, 0.0 }
 0x65b   : > { %v1470_v19 = vadd.f32 %v2044_v11, %v1469_v18  ;;  %v1481_v22 = vmax.f32 %v1467_v15, 0.0 }
 0x65c   : > { %v1484_v21 = vmax.f32 %v1478_v17, 0.0 }
 0x65d   : > { %v1482_v23 = vmax.f32 %v1470_v19, 0.0 }
 0x65e   : > { %v1486_v24 = vpack.c.bf16 %v1484_v21, %v1483_v20 }
 0x65f   : > { %v1485_v25 = vpack.c.bf16 %v1482_v23, %v1481_v22 }
 0x661   : > { %2298 = vmatprep.mubr.bf16.mxu0 %v1485_v25 }
 0x662   : > { %2299 = vmatmul.mubr.bf16.vlgmr.msra.gmra.mrb[12].mxu0 %v1486_v24 }
 0x735   : > { %v2300_v29 = vpop.f32.mrb[12].mxu0 }
 0x736   : > { %v1601_v30 = vadd.f32 %v2300_v29, %v2053_v28  ;;  %v1592_v31 = vpop.f32.mrb[13].mxu0 }
 0x737   : > { %v1593_v32 = vadd.f32 %v2053_v28, %v1592_v31  ;;  %v2301_v33 = vpop.f32.mrb[14].mxu0 }
 0x738   : > { %v1604_v34 = vadd.f32 %v2301_v33, %v2053_v28  ;;  %v1595_v35 = vpop.f32.mrb[15].mxu0  ;;  %v1609_v37 = vmax.f32 %v1601_v30, 0.0 }
 0x739   : > { %v1596_v36 = vadd.f32 %v2053_v28, %v1595_v35  ;;  %v1607_v39 = vmax.f32 %v1593_v32, 0.0 }
 0x73a   : > { %v1610_v38 = vmax.f32 %v1604_v34, 0.0 }
 0x73b   : > { %v1608_v40 = vmax.f32 %v1596_v36, 0.0 }
 0x73c   : > { %v1612_v41 = vpack.c.bf16 %v1610_v38, %v1609_v37 }
 0x73d   : > { %v1611_v42 = vpack.c.bf16 %v1608_v40, %v1607_v39 }
 0x73f   : > { %2318 = vmatprep.mubr.bf16.mxu1 %v1611_v42 }
 0x740   : > { %2319 = vmatmul.mubr.bf16.vlgmr.msra.gmra.mrb[12].mxu1 %v1612_v41 }
 0x741   : > { %2807 = shalt.err (!%p2804_p10)
}
 0x742   : > { %s2808_s10 = scalar_lea.hbm %s3407_s24, 512  ;;  %s2812_s25 = scalar_lea.hbm %s3560_s18, 1024 }
 0x743   : > { %p2809_p11 = scmp.ne.s32.totalorder %s3407_s24, %s2808_s10  ;;  %p2813_p7 = scmp.lt.u32.totalorder %s3407_s24, %s3560_s18 }
 0x744   : > { %p2814_p6 = scmp.lt.u32.totalorder %s2812_s25, %s2808_s10  ;;  %p2816_p12 = scmp.lt.u32.totalorder %s2808_s10, %s3407_s24 }
 0x745   : > { %p2810_p3 = pnand %p2809_p11, %p3561_p1 }
 0x746   : > { %p2815_p9 = por %p2814_p6, %p2813_p7 }
 0x747   : > { %p2811_p5 = pneg %p2810_p3 }
 0x748   : > { %p2817_p13 = por %p2816_p12, %p2815_p9 }
 0x74a   : > { %p2818_p0 = pnand %p2817_p13, %p2811_p5 }
 0x74c   : > { %2821 = shalt.err (!%p2818_p0)
}
 0x74d   : > { %s3522_s22 = smov 128   ;;  %s2925_s23 = smov 8  }
 0x74e   : > { %s3562_s17 = scalar_lea.sflag [#allocation4], %s3337_s6  ;;  %s3563_s25 = sld [smem:[#allocation35_spill]] }
 0x74f   : > { %2356 = dma.vmem_to_hbm [thread:$0]  (%p3561_p1), %s3399_s16, 512, %s3407_s24, %s3562_s17, %s3522_s22, %s3522_s22, %s2925_s23  }
 0x750   : > { %s720_s16 = scalar_lea.vmem [#allocation18], %s3340_s14  ;;  %s3564_s10 = sshll.u32 %s3043_s1, 9 }
 0x751   : > { %s1792_s24 = sshll.u32 %s720_s16, 4  ;;  %s3565_s19 = sld [smem:[#allocation37_spill]]  ;;  %s3447_s24 = int_to_ptr.vmem [resolvable:$true] %s1792_s24 }
 0x752   : > { %s2926_s1 = smov [#allocation18]  }
 0x753   : > { %s2826_s22 = sshll.u32 %s2926_s1, 4  ;;  %s2827_s22 = int_to_ptr.vmem [resolvable:$false] %s2826_s22 }
 0x754   : > { %v2062_v43 = vld [vmem:[%s3563_s25] ss:$0 sm:$0xff]  ;;  %s2822_s25 = scalar_lea.vmem %s3447_s24, 512  ;;  %s2828_s20 = scalar_lea.vmem %s2827_s22, 1024 }
 0x755   : > { %p2823_p2 = scmp.ne.s32.totalorder %s3447_s24, %s2822_s25  ;;  %p2829_p10 = scmp.lt.s32.totalorder %s3447_s24, %s2827_s22 }
 0x756   : > { %p2830_p11 = scmp.lt.s32.totalorder %s2828_s20, %s2822_s25 }
 0x757   : > { %s3445_s2 = scalar_lea.hbm %s3565_s19, %s3564_s10  ;;  %p2824_p8 = pnand %p2823_p2, %p3561_p1 }
 0x758   : > { %p2831_p3 = por %p2830_p11, %p2829_p10 }
 0x759   : > { %p2825_p4 = pneg %p2824_p8 }
 0x75b   : > { %p2832_p5 = pnand %p2831_p3, %p2825_p4 }
 0x813   : > { %v2320_v44 = vpop.f32.mrb[12].mxu1 }
 0x814   : > { %v1727_v45 = vadd.f32 %v2320_v44, %v2062_v43  ;;  %v1718_v46 = vpop.f32.mrb[13].mxu1 }
 0x815   : > { %v1719_v47 = vadd.f32 %v2062_v43, %v1718_v46  ;;  %v2321_v48 = vpop.f32.mrb[14].mxu1 }
 0x816   : > { %v1735_v49 = vsub.f32 0.0, %v1727_v45  ;;  %v1730_v50 = vadd.f32 %v2321_v48, %v2062_v43  ;;  %v1721_v51 = vpop.f32.mrb[15].mxu1 }
 0x817   : > { %v1733_v52 = vsub.f32 0.0, %v1719_v47  ;;  %v1722_v53 = vadd.f32 %v2062_v43, %v1721_v51 }
 0x818   : > { %v1741_v54 = vmul.f32 1.442695, %v1735_v49  ;;  %v1736_v55 = vsub.f32 0.0, %v1730_v50 }
 0x819   : > { %v1737_v56 = vmul.f32 1.442695, %v1733_v52  ;;  %v1734_v57 = vsub.f32 0.0, %v1722_v53 }
 0x81a   : > { %2524 = vpow2.f32 %v1741_v54  ;;  %v1743_v58 = vmul.f32 1.442695, %v1736_v55 }
 0x81b   : > { %2526 = vpow2.f32 %v1737_v56  ;;  %v1739_v59 = vmul.f32 1.442695, %v1734_v57 }
 0x81c   : > { %2528 = vpow2.f32 %v1743_v58 }
 0x81d   : > { %2530 = vpow2.f32 %v1739_v59 }
 0x824   : > { %v2525_v60 = vpop.eup %2524 }
 0x825   : > { %v2527_v61 = vpop.eup %2526  ;;  %v1747_v62 = vadd.f32 1.0, %v2525_v60 }
 0x826   : > { %v2529_v63 = vpop.eup %2528  ;;  %v1745_v0 = vadd.f32 1.0, %v2527_v61 }
 0x827   : > { %v2531_v1 = vpop.eup %2530  ;;  %2532 = vrcp.f32 %v1747_v62  ;;  %v1748_v2 = vadd.f32 1.0, %v2529_v63 }
 0x828   : > { %2534 = vrcp.f32 %v1745_v0  ;;  %v1746_v3 = vadd.f32 1.0, %v2531_v1 }
 0x829   : > { %2536 = vrcp.f32 %v1748_v2 }
 0x82a   : > { %2538 = vrcp.f32 %v1746_v3 }
 0x831   : > { %v2533_v4 = vpop.eup %2532 }
 0x832   : > { %v2535_v5 = vpop.eup %2534  ;;  %1755 = vst [vmem:[%s720_s16 + $0x10] sm:$0xff] %v2533_v4 }
 0x833   : > { %v2537_v6 = vpop.eup %2536  ;;  %1753 = vst [vmem:[%s720_s16] sm:$0xff] %v2535_v5 }
 0x834   : > { %v2539_v7 = vpop.eup %2538  ;;  %1756 = vst [vmem:[%s720_s16 + $0x18] sm:$0xff] %v2537_v6 }
 0x835   : > { %1754 = vst [vmem:[%s720_s16 + $0x8] sm:$0xff] %v2539_v7 }
 0x836   : > { %2835 = shalt.err (!%p2832_p5)
}
 0x837   : > { %s2836_s16 = scalar_lea.hbm %s3445_s2, 512  ;;  %s2840_s1 = scalar_lea.hbm %s3565_s19, 1024 }
 0x838   : > { %p2837_p7 = scmp.ne.s32.totalorder %s3445_s2, %s2836_s16  ;;  %p2841_p12 = scmp.lt.u32.totalorder %s3445_s2, %s3565_s19 }
 0x839   : > { %p2842_p13 = scmp.lt.u32.totalorder %s2840_s1, %s2836_s16  ;;  %p2844_p2 = scmp.lt.u32.totalorder %s2836_s16, %s3445_s2 }
 0x83a   : > { %p2838_p6 = pnand %p2837_p7, %p3561_p1 }
 0x83b   : > { %p2843_p0 = por %p2842_p13, %p2841_p12 }
 0x83c   : > { %p2839_p9 = pneg %p2838_p6 }
 0x83d   : > { %p2845_p8 = por %p2844_p2, %p2843_p0 }
 0x83f   : > { %p2846_p4 = pnand %p2845_p8, %p2839_p9 }
 0x841   : > { %2849 = shalt.err (!%p2846_p4)
}
 0x842   : > { %s3566_s25 = smov 128   ;;  %s3567_s20 = scalar_lea.sflag [#allocation19], %s3337_s6 }
 0x843   : > { %2357 = dma.vmem_to_hbm [thread:$0]  (%p3561_p1), %s3447_s24, 512, %s3445_s2, %s3567_s20, %s3566_s25, %s3566_s25, %s2925_s23  }
 0x844 PF: > { %s1807_s14 = sand.u32 1, %s2896_s27   ;;  %p3568_p10 = scmp.ne.s32.totalorder %s3542_s26, 0 }
 0x845   : > { %p3569_p11 = scmp.ge.s32.totalorder %s2908_s30, 2  ;;  %s1808_s16 = scalar_lea.sflag [#allocation4], %s1807_s14 }
 0x847   : > { %p2390_p3 = pnand %p3569_p11, %p3568_p10 }
 0x849   : > { %2887 = dma.done.wait (!%p2390_p3), %s1808_s16, 512  }
 0x84a   : > { %2889 = vsyncadd (!%p2390_p3), %s1808_s16, 4294966784  ;;  %s1817_s0 = scalar_lea.sflag [#allocation19], %s1807_s14 }
 0x84b   : > { %2891 = dma.done.wait (!%p2390_p3), %s1817_s0, 512  }
 0x84c   : > { %2893 = vsyncadd (!%p2390_p3), %s1817_s0, 4294966784  ;;  %p39_p1 = scmp.ge.s32.totalorder %s3258_s21, 4   ;;  %s3570_s27 = smov %s2900_s28 }
 0x84d   : > { %s3571_s28 = smov %s2904_s29  ;;  %s3572_s29 = smov %s3269_s8 }
 0x84e   : > { %s3573_s30 = smov %s3258_s21  ;;  %41 = sbr.rel (!%p39_p1) target bundleno = 23 (0x17), region = 182 }
 0x855   :  { %1822 = vsyncpa [#allocation3], 1 }
 0x856   :  { %1824 = vsyncpa [#allocation3 + $0x1], 1 }
 0x857   :  { %1825 = vsyncpa [#allocation6], 1 }
 0x858   :  { %1826 = vsyncpa [#allocation9], 1 }
 0x859   :  { %1827 = vsyncpa [#allocation12], 1 }
 0x85a   :  { %1828 = vsyncpa [#allocation15], 1 }
 0x85b   :  { %1829 = vsyncpa [#allocation4], 1 }
 0x85c   :  { %1831 = vsyncpa [#allocation4 + $0x1], 1 }
 0x85d   :  { %1832 = vsyncpa [#allocation19], 1 }
 0x85e   :  { %1834 = vsyncpa [#allocation19 + $0x1], 1 }

</bundles_post_ra>
